<compile_context>
chip_gen: v7x
topology: tpu7x:2x2x1
jax: 0.10.0
libtpu: 0.0.40
codegen_flags: <defaults>
</compile_context>

<pallas_src>
import jax
import jax.numpy as jnp
from jax.experimental import pallas as pl
from jax.experimental.pallas import tpu as pltpu

B = 8            # batch
Z = 32           # z_size
HC = 32          # conductor hidden size (n_layers = 1)
HD = 32          # bottom decoder hidden size (n_layers = 1)
V = 16           # output_size (vocab)
NSUB = 2         # n_subsequences
SUBLEN = 4       # subsequence length
TRGLEN = NSUB * SUBLEN   # total decoded length

assert 4 * HC == 4 * HD == 128  # full-vreg gate trick assumes 128 gate lanes

# ---- packed parameter slab layout (row offsets are 8-aligned) --------------
ROW_FCW = 0       # fc_state weight        (Z, 2*HC)
ROW_FCB = 32      # fc_state bias          (1, 2*HC)
ROW_CWHH = 40     # conductor W_hh (g x2)  (HC, 4*HC)
ROW_CBE = 72      # conductor eff. bias    (1, 4*HC)   = b + ones@W_ih, g x2
ROW_DTOK = 80     # decoder W_ih[:V] (g x2)(V, 4*HD)
ROW_CCAT = 96     # [W_ih[V:] (g x2) | dec fc_state W]  (HC, 4*HD + 2*HD)
ROW_CCATB = 128   # [dec bias (g x2) | dec fc_state b]  (1, 4*HD + 2*HD)
ROW_HCAT = 136    # [W_hh (g x2) | W_out]               (HD, 4*HD + V)
ROW_DOB = 168     # output projection bias              (1, V)
SLAB_ROWS = 176
SLAB_COLS = 256


def pack_params(params):
    """Fuse / pre-scale / pad the 12 raw parameter arrays into one f32 slab."""
    (fc_w, fc_b, cwih, cwhh, cb, dfc_w, dfc_b, dwih, dwhh, db, dow, dob) = params

    def gscale(x, h):
        # pre-scale the g-gate (tanh) columns [2h, 3h) by 2 so a single sigmoid
        # pass in the kernel covers all four gates (tanh(x) = 2*sigmoid(2x)-1).
        col = jnp.arange(x.shape[-1])
        s = jnp.where((col >= 2 * h) & (col < 3 * h), 2.0, 1.0).astype(x.dtype)
        return x * s

    cwhh_s = gscale(cwhh, HC)
    cb_eff = gscale(cb + cwih, HC)          # conductor input ones(B,1) folded in
    dwih_s = gscale(dwih, HD)
    db_s = gscale(db, HD)
    dwhh_s = gscale(dwhh, HD)

    dwih_tok = dwih_s[:V]                   # rows hit by the token one-hot
    dwih_ctx = dwih_s[V:]                   # rows hit by the conductor embedding
    ccat = jnp.concatenate([dwih_ctx, dfc_w], axis=1)    # (HC, 192)
    ccat_b = jnp.concatenate([db_s, dfc_b], axis=1)      # (1, 192)
    hcat = jnp.concatenate([dwhh_s, dow], axis=1)        # (HD, 144)

    slab = jnp.zeros((SLAB_ROWS, SLAB_COLS), jnp.float32)

    def put(s, r, x):
        return s.at[r:r + x.shape[0], :x.shape[1]].set(x)

    slab = put(slab, ROW_FCW, fc_w)
    slab = put(slab, ROW_FCB, fc_b)
    slab = put(slab, ROW_CWHH, cwhh_s)
    slab = put(slab, ROW_CBE, cb_eff)
    slab = put(slab, ROW_DTOK, dwih_tok)
    slab = put(slab, ROW_CCAT, ccat)
    slab = put(slab, ROW_CCATB, ccat_b)
    slab = put(slab, ROW_HCAT, hcat)
    slab = put(slab, ROW_DOB, dob)
    return slab


def hier_decoder_kernel(z_ref, slab_ref, tok0_ref, out_ref, tokens_ref):
    # ---- hoist: slice the packed slab once; cast MXU operands to bf16 ------
    fc_w = slab_ref[ROW_FCW:ROW_FCW + Z, 0:2 * HC].astype(jnp.bfloat16)
    fc_b = slab_ref[ROW_FCB:ROW_FCB + 1, 0:2 * HC]
    cwhh = slab_ref[ROW_CWHH:ROW_CWHH + HC, 0:4 * HC].astype(jnp.bfloat16)
    cb_eff = jnp.broadcast_to(slab_ref[ROW_CBE:ROW_CBE + 1, 0:4 * HC], (B, 4 * HC))
    dwih_tok = slab_ref[ROW_DTOK:ROW_DTOK + V, 0:4 * HD].astype(jnp.bfloat16)
    ccat = slab_ref[ROW_CCAT:ROW_CCAT + HC, 0:6 * HD].astype(jnp.bfloat16)
    ccat_b = jnp.broadcast_to(slab_ref[ROW_CCATB:ROW_CCATB + 1, 0:6 * HD], (B, 6 * HD))
    hcat = slab_ref[ROW_HCAT:ROW_HCAT + HD, 0:4 * HD + V].astype(jnp.bfloat16)
    dob_b = jnp.broadcast_to(slab_ref[ROW_DOB:ROW_DOB + 1, 0:V], (B, V))
    iota_v = jax.lax.broadcasted_iota(jnp.int32, (B, V), 1)

    def lstm_update(gates, c_prev, hidden):
        # gates arrive pre-scaled (g lanes carry 2x) -> a single 128-lane
        # sigmoid pass gives i/f/o directly and tanh(g) = 2*sigmoid(2g)-1.
        s = jax.nn.sigmoid(gates)
        i = s[:, 0 * hidden:1 * hidden]
        f = s[:, 1 * hidden:2 * hidden]
        g = 2.0 * s[:, 2 * hidden:3 * hidden] - 1.0
        o = s[:, 3 * hidden:4 * hidden]
        c_new = f * c_prev + i * g
        h_new = o * jnp.tanh(c_new)
        return h_new, c_new

    def argmax16(logits):
        # single-pass 4-level compare/select tree over the 16 valid lanes,
        # carrying (value, original-index); ties -> smallest index (first-max).
        val = logits
        idx = jax.lax.broadcasted_iota(jnp.int32, (B, V), 1)
        half = V // 2
        while half >= 1:
            v_lo, v_hi = val[:, :half], val[:, half:2 * half]
            i_lo, i_hi = idx[:, :half], idx[:, half:2 * half]
            take_hi = (v_hi > v_lo) | ((v_hi == v_lo) & (i_hi < i_lo))
            val = jnp.where(take_hi, v_hi, v_lo)
            idx = jnp.where(take_hi, i_hi, i_lo)
            half //= 2
        return idx                                        # (B, 1) int32

    # ---- fc_state: Tanh(Linear(z)) split into conductor (hidden, cell) -----
    states = jnp.tanh(jnp.dot(z_ref[...].astype(jnp.bfloat16), fc_w,
                              preferred_element_type=jnp.float32) + fc_b)
    h_cond = states[:, 0:HC]
    c_cond = states[:, HC:2 * HC]

    token = tok0_ref[...]                                 # (B, 1) int32
    logits_list = []
    token_list = []

    for t in range(NSUB):                                 # n_subsequences (static)
        # conductor LSTM step: only h @ W_hh hits the MXU (input folded in bias)
        cg = jnp.dot(h_cond.astype(jnp.bfloat16), cwhh,
                     preferred_element_type=jnp.float32) + cb_eff
        h_cond, c_cond = lstm_update(cg, c_cond, HC)
        c_emb = h_cond.astype(jnp.bfloat16)               # conductor embedding

        # fused per-subsequence prologue: ONE dot gives both the W_ih[c] gate
        # contribution (incl. bias) and the decoder state-init preactivation.
        y2 = jnp.dot(c_emb, ccat, preferred_element_type=jnp.float32) + ccat_b
        c_contrib = y2[:, 0:4 * HD]
        dstates = jnp.tanh(y2[:, 4 * HD:6 * HD])
        h_dec = dstates[:, 0:HD]
        c_dec = dstates[:, HD:2 * HD]

        # first W_hh gate contribution (logits half of the fused dot unused here)
        whh_contrib = jnp.dot(h_dec.astype(jnp.bfloat16), hcat,
                              preferred_element_type=jnp.float32)[:, 0:4 * HD]

        for s in range(SUBLEN):                           # subsequence loop (static)
            onehot = (iota_v == token).astype(jnp.bfloat16)      # (B, V)
            dg = (jnp.dot(onehot, dwih_tok, preferred_element_type=jnp.float32)
                  + whh_contrib + c_contrib)
            h_dec, c_dec = lstm_update(dg, c_dec, HD)
            # fused W_hh + output projection: one MXU dot per serial step
            y = jnp.dot(h_dec.astype(jnp.bfloat16), hcat,
                        preferred_element_type=jnp.float32)      # (B, 144)
            whh_contrib = y[:, 0:4 * HD]                  # carried to next step
            logits = y[:, 4 * HD:4 * HD + V] + dob_b      # (B, V)
            logits_list.append(logits)
            # TODO(synk): torch Categorical sampling replaced by deterministic argmax
            token = argmax16(logits)
            token_list.append(token)

    # Single lane-dense stores instead of per-step masked partial stores.
    out_ref[...] = jnp.concatenate(logits_list, axis=-1)  # (B, TRGLEN*V)
    tokens_ref[...] = jnp.concatenate(token_list, axis=-1)  # (B, TRGLEN)


@jax.jit
def hierarchical_seq_decoder(z, slab, initial_input):
    out_shapes = (
        jax.ShapeDtypeStruct((B, TRGLEN * V), jnp.float32),   # lane-dense logits
        jax.ShapeDtypeStruct((B, TRGLEN), jnp.int32),         # output_tokens
    )
    vmem = pl.BlockSpec(memory_space=pltpu.MemorySpace.VMEM)
    flat_logits, tokens = pl.pallas_call(
        hier_decoder_kernel,
        out_shape=out_shapes,
        in_specs=[vmem, vmem, vmem],
        out_specs=(vmem, vmem),
    )(z, slab, initial_input)
    return flat_logits.reshape(B, TRGLEN, V), tokens


if __name__ == "__main__":
    key = jax.random.PRNGKey(0)
    keys = jax.random.split(key, 16)

    def w(k, shape, scale=0.1):
        return scale * jax.random.normal(k, shape, jnp.float32)

    params = (
        w(keys[0], (Z, 2 * HC)),          # fc_state weight  (z_size -> n_states)
        w(keys[1], (1, 2 * HC)),          # fc_state bias
        w(keys[2], (1, 4 * HC)),          # conductor LSTM W_ih (input_size=1)
        w(keys[3], (HC, 4 * HC)),         # conductor LSTM W_hh
        w(keys[4], (1, 4 * HC)),          # conductor LSTM bias (b_ih + b_hh)
        w(keys[5], (HC, 2 * HD)),         # bottom decoder fc_state weight
        w(keys[6], (1, 2 * HD)),          # bottom decoder fc_state bias
        w(keys[7], (V + HC, 4 * HD)),     # bottom decoder LSTM W_ih
        w(keys[8], (HD, 4 * HD)),         # bottom decoder LSTM W_hh
        w(keys[9], (1, 4 * HD)),          # bottom decoder LSTM bias (b_ih + b_hh)
        w(keys[10], (HD, V)),             # bottom decoder output projection W
        w(keys[11], (1, V)),              # bottom decoder output projection b
    )
    z = jax.random.normal(keys[12], (B, Z), jnp.float32)
    tok0 = jax.random.randint(keys[13], (B, 1), 0, V, jnp.int32)  # initial_input

    slab = jax.block_until_ready(pack_params(params))     # one-time host-side pack

    outputs, tokens = hierarchical_seq_decoder(z, slab, tok0)
    jax.block_until_ready((outputs, tokens))

    assert outputs.shape == (B, TRGLEN, V)
    assert tokens.shape == (B, TRGLEN)
    assert bool(jnp.all(jnp.isfinite(outputs)))
    assert bool(jnp.all((tokens >= 0) & (tokens < V)))
    print("KERNEL_OK")
</pallas_src>

<mosaic_0001>
module attributes {stable_mosaic.version = 11 : i64} {
  func.func @hier_decoder_kernel(%arg0: memref<8x32xf32, #tpu.memory_space<vmem>>, %arg1: memref<176x256xf32, #tpu.memory_space<vmem>>, %arg2: memref<8x1xi32, #tpu.memory_space<vmem>>, %arg3: memref<8x128xf32, #tpu.memory_space<vmem>>, %arg4: memref<8x8xi32, #tpu.memory_space<vmem>>) attributes {dimension_semantics = [], scalar_prefetch = 0 : i64, scratch_operands = 0 : i64, tpu.core_type = #tpu.core_type<tc>} {
    %c0 = arith.constant 0 : index
    %c0_0 = arith.constant 0 : index
    %0 = vector.load %arg1[%c0, %c0_0] : memref<176x256xf32, #tpu.memory_space<vmem>>, vector<32x64xf32>
    %1 = arith.truncf %0 : vector<32x64xf32> to vector<32x64xbf16>
    %c32 = arith.constant 32 : index
    %c0_1 = arith.constant 0 : index
    %2 = vector.load %arg1[%c32, %c0_1] : memref<176x256xf32, #tpu.memory_space<vmem>>, vector<1x64xf32>
    %c40 = arith.constant 40 : index
    %c0_2 = arith.constant 0 : index
    %3 = vector.load %arg1[%c40, %c0_2] : memref<176x256xf32, #tpu.memory_space<vmem>>, vector<32x128xf32>
    %4 = arith.truncf %3 : vector<32x128xf32> to vector<32x128xbf16>
    %c72 = arith.constant 72 : index
    %c0_3 = arith.constant 0 : index
    %5 = vector.load %arg1[%c72, %c0_3] : memref<176x256xf32, #tpu.memory_space<vmem>>, vector<1x128xf32>
    %6 = vector.shape_cast %5 : vector<1x128xf32> to vector<1x128xf32>
    %7 = vector.broadcast %6 : vector<1x128xf32> to vector<8x128xf32>
    %c80 = arith.constant 80 : index
    %c0_4 = arith.constant 0 : index
    %8 = vector.load %arg1[%c80, %c0_4] : memref<176x256xf32, #tpu.memory_space<vmem>>, vector<16x128xf32>
    %9 = arith.truncf %8 : vector<16x128xf32> to vector<16x128xbf16>
    %c96 = arith.constant 96 : index
    %c0_5 = arith.constant 0 : index
    %10 = vector.load %arg1[%c96, %c0_5] : memref<176x256xf32, #tpu.memory_space<vmem>>, vector<32x192xf32>
    %11 = arith.truncf %10 : vector<32x192xf32> to vector<32x192xbf16>
    %c128 = arith.constant 128 : index
    %c0_6 = arith.constant 0 : index
    %12 = vector.load %arg1[%c128, %c0_6] : memref<176x256xf32, #tpu.memory_space<vmem>>, vector<1x192xf32>
    %13 = vector.shape_cast %12 : vector<1x192xf32> to vector<1x192xf32>
    %14 = vector.broadcast %13 : vector<1x192xf32> to vector<8x192xf32>
    %c136 = arith.constant 136 : index
    %c0_7 = arith.constant 0 : index
    %15 = vector.load %arg1[%c136, %c0_7] : memref<176x256xf32, #tpu.memory_space<vmem>>, vector<32x144xf32>
    %16 = arith.truncf %15 : vector<32x144xf32> to vector<32x144xbf16>
    %c168 = arith.constant 168 : index
    %c0_8 = arith.constant 0 : index
    %17 = vector.load %arg1[%c168, %c0_8] : memref<176x256xf32, #tpu.memory_space<vmem>>, vector<1x16xf32>
    %18 = vector.shape_cast %17 : vector<1x16xf32> to vector<1x16xf32>
    %19 = vector.broadcast %18 : vector<1x16xf32> to vector<8x16xf32>
    %20 = tpu.iota {dimensions = array<i32: 1>} : vector<8x16xi32>
    %c0_9 = arith.constant 0 : index
    %c0_10 = arith.constant 0 : index
    %21 = vector.load %arg0[%c0_9, %c0_10] : memref<8x32xf32, #tpu.memory_space<vmem>>, vector<8x32xf32>
    %22 = arith.truncf %21 : vector<8x32xf32> to vector<8x32xbf16>
    %cst = arith.constant dense<0.000000e+00> : vector<8x64xf32>
    %23 = tpu.matmul %22, %1, %cst {dimension_numbers = #tpu.dot_dimension_numbers<[1], [0], [0], [1], [0, 0, 1, 1], [], []>} : vector<8x32xbf16>, vector<32x64xbf16>, vector<8x64xf32> -> vector<8x64xf32>
    %24 = vector.broadcast %2 : vector<1x64xf32> to vector<8x64xf32>
    %25 = arith.addf %23, %24 : vector<8x64xf32>
    %26 = math.tanh %25 : vector<8x64xf32>
    %27 = vector.extract_strided_slice %26 {offsets = [0, 0], sizes = [8, 32], strides = [1, 1]} : vector<8x64xf32> to vector<8x32xf32>
    %28 = vector.extract_strided_slice %26 {offsets = [0, 32], sizes = [8, 32], strides = [1, 1]} : vector<8x64xf32> to vector<8x32xf32>
    %c0_11 = arith.constant 0 : index
    %c0_12 = arith.constant 0 : index
    %29 = vector.load %arg2[%c0_11, %c0_12] : memref<8x1xi32, #tpu.memory_space<vmem>>, vector<8x1xi32>
    %30 = arith.truncf %27 : vector<8x32xf32> to vector<8x32xbf16>
    %cst_13 = arith.constant dense<0.000000e+00> : vector<8x128xf32>
    %31 = tpu.matmul %30, %4, %cst_13 {dimension_numbers = #tpu.dot_dimension_numbers<[1], [0], [0], [1], [0, 0, 1, 1], [], []>} : vector<8x32xbf16>, vector<32x128xbf16>, vector<8x128xf32> -> vector<8x128xf32>
    %32 = arith.addf %31, %7 : vector<8x128xf32>
    %33 = arith.negf %32 : vector<8x128xf32>
    %34 = math.exp %33 : vector<8x128xf32>
    %cst_14 = arith.constant 1.000000e+00 : f32
    %35 = vector.broadcast %cst_14 : f32 to vector<8x128xf32>
    %36 = arith.addf %35, %34 : vector<8x128xf32>
    %37 = arith.divf %35, %36 : vector<8x128xf32>
    %38 = vector.extract_strided_slice %37 {offsets = [0, 0], sizes = [8, 32], strides = [1, 1]} : vector<8x128xf32> to vector<8x32xf32>
    %39 = vector.extract_strided_slice %37 {offsets = [0, 32], sizes = [8, 32], strides = [1, 1]} : vector<8x128xf32> to vector<8x32xf32>
    %40 = vector.extract_strided_slice %37 {offsets = [0, 64], sizes = [8, 32], strides = [1, 1]} : vector<8x128xf32> to vector<8x32xf32>
    %cst_15 = arith.constant 2.000000e+00 : f32
    %41 = vector.broadcast %cst_15 : f32 to vector<8x32xf32>
    %42 = arith.mulf %41, %40 : vector<8x32xf32>
    %cst_16 = arith.constant 1.000000e+00 : f32
    %43 = vector.broadcast %cst_16 : f32 to vector<8x32xf32>
    %44 = arith.subf %42, %43 : vector<8x32xf32>
    %45 = vector.extract_strided_slice %37 {offsets = [0, 96], sizes = [8, 32], strides = [1, 1]} : vector<8x128xf32> to vector<8x32xf32>
    %46 = arith.mulf %39, %28 : vector<8x32xf32>
    %47 = arith.mulf %38, %44 : vector<8x32xf32>
    %48 = arith.addf %46, %47 : vector<8x32xf32>
    %49 = math.tanh %48 : vector<8x32xf32>
    %50 = arith.mulf %45, %49 : vector<8x32xf32>
    %51 = arith.truncf %50 : vector<8x32xf32> to vector<8x32xbf16>
    %cst_17 = arith.constant dense<0.000000e+00> : vector<8x192xf32>
    %52 = tpu.matmul %51, %11, %cst_17 {dimension_numbers = #tpu.dot_dimension_numbers<[1], [0], [0], [1], [0, 0, 1, 1], [], []>} : vector<8x32xbf16>, vector<32x192xbf16>, vector<8x192xf32> -> vector<8x192xf32>
    %53 = arith.addf %52, %14 : vector<8x192xf32>
    %54 = vector.extract_strided_slice %53 {offsets = [0, 0], sizes = [8, 128], strides = [1, 1]} : vector<8x192xf32> to vector<8x128xf32>
    %55 = vector.extract_strided_slice %53 {offsets = [0, 128], sizes = [8, 64], strides = [1, 1]} : vector<8x192xf32> to vector<8x64xf32>
    %56 = math.tanh %55 : vector<8x64xf32>
    %57 = vector.extract_strided_slice %56 {offsets = [0, 0], sizes = [8, 32], strides = [1, 1]} : vector<8x64xf32> to vector<8x32xf32>
    %58 = vector.extract_strided_slice %56 {offsets = [0, 32], sizes = [8, 32], strides = [1, 1]} : vector<8x64xf32> to vector<8x32xf32>
    %59 = arith.truncf %57 : vector<8x32xf32> to vector<8x32xbf16>
    %cst_18 = arith.constant dense<0.000000e+00> : vector<8x144xf32>
    %60 = tpu.matmul %59, %16, %cst_18 {dimension_numbers = #tpu.dot_dimension_numbers<[1], [0], [0], [1], [0, 0, 1, 1], [], []>} : vector<8x32xbf16>, vector<32x144xbf16>, vector<8x144xf32> -> vector<8x144xf32>
    %61 = vector.extract_strided_slice %60 {offsets = [0, 0], sizes = [8, 128], strides = [1, 1]} : vector<8x144xf32> to vector<8x128xf32>
    %62 = vector.broadcast %29 : vector<8x1xi32> to vector<8x16xi32>
    %63 = arith.cmpi eq, %20, %62 : vector<8x16xi32>
    %64 = arith.extui %63 : vector<8x16xi1> to vector<8x16xi32>
    %65 = arith.sitofp %64 : vector<8x16xi32> to vector<8x16xf32>
    %66 = arith.truncf %65 : vector<8x16xf32> to vector<8x16xbf16>
    %cst_19 = arith.constant dense<0.000000e+00> : vector<8x128xf32>
    %67 = tpu.matmul %66, %9, %cst_19 {dimension_numbers = #tpu.dot_dimension_numbers<[1], [0], [0], [1], [0, 0, 1, 1], [], []>} : vector<8x16xbf16>, vector<16x128xbf16>, vector<8x128xf32> -> vector<8x128xf32>
    %68 = arith.addf %67, %61 : vector<8x128xf32>
    %69 = arith.addf %68, %54 : vector<8x128xf32>
    %70 = arith.negf %69 : vector<8x128xf32>
    %71 = math.exp %70 : vector<8x128xf32>
    %cst_20 = arith.constant 1.000000e+00 : f32
    %72 = vector.broadcast %cst_20 : f32 to vector<8x128xf32>
    %73 = arith.addf %72, %71 : vector<8x128xf32>
    %74 = arith.divf %72, %73 : vector<8x128xf32>
    %75 = vector.extract_strided_slice %74 {offsets = [0, 0], sizes = [8, 32], strides = [1, 1]} : vector<8x128xf32> to vector<8x32xf32>
    %76 = vector.extract_strided_slice %74 {offsets = [0, 32], sizes = [8, 32], strides = [1, 1]} : vector<8x128xf32> to vector<8x32xf32>
    %77 = vector.extract_strided_slice %74 {offsets = [0, 64], sizes = [8, 32], strides = [1, 1]} : vector<8x128xf32> to vector<8x32xf32>
    %cst_21 = arith.constant 2.000000e+00 : f32
    %78 = vector.broadcast %cst_21 : f32 to vector<8x32xf32>
    %79 = arith.mulf %78, %77 : vector<8x32xf32>
    %cst_22 = arith.constant 1.000000e+00 : f32
    %80 = vector.broadcast %cst_22 : f32 to vector<8x32xf32>
    %81 = arith.subf %79, %80 : vector<8x32xf32>
    %82 = vector.extract_strided_slice %74 {offsets = [0, 96], sizes = [8, 32], strides = [1, 1]} : vector<8x128xf32> to vector<8x32xf32>
    %83 = arith.mulf %76, %58 : vector<8x32xf32>
    %84 = arith.mulf %75, %81 : vector<8x32xf32>
    %85 = arith.addf %83, %84 : vector<8x32xf32>
    %86 = math.tanh %85 : vector<8x32xf32>
    %87 = arith.mulf %82, %86 : vector<8x32xf32>
    %88 = arith.truncf %87 : vector<8x32xf32> to vector<8x32xbf16>
    %cst_23 = arith.constant dense<0.000000e+00> : vector<8x144xf32>
    %89 = tpu.matmul %88, %16, %cst_23 {dimension_numbers = #tpu.dot_dimension_numbers<[1], [0], [0], [1], [0, 0, 1, 1], [], []>} : vector<8x32xbf16>, vector<32x144xbf16>, vector<8x144xf32> -> vector<8x144xf32>
    %90 = vector.extract_strided_slice %89 {offsets = [0, 0], sizes = [8, 128], strides = [1, 1]} : vector<8x144xf32> to vector<8x128xf32>
    %91 = vector.extract_strided_slice %89 {offsets = [0, 128], sizes = [8, 16], strides = [1, 1]} : vector<8x144xf32> to vector<8x16xf32>
    %92 = arith.addf %91, %19 : vector<8x16xf32>
    %93 = tpu.iota {dimensions = array<i32: 1>} : vector<8x16xi32>
    %94 = vector.extract_strided_slice %92 {offsets = [0, 0], sizes = [8, 8], strides = [1, 1]} : vector<8x16xf32> to vector<8x8xf32>
    %95 = vector.extract_strided_slice %92 {offsets = [0, 8], sizes = [8, 8], strides = [1, 1]} : vector<8x16xf32> to vector<8x8xf32>
    %96 = vector.extract_strided_slice %93 {offsets = [0, 0], sizes = [8, 8], strides = [1, 1]} : vector<8x16xi32> to vector<8x8xi32>
    %97 = vector.extract_strided_slice %93 {offsets = [0, 8], sizes = [8, 8], strides = [1, 1]} : vector<8x16xi32> to vector<8x8xi32>
    %98 = arith.cmpf ogt, %95, %94 : vector<8x8xf32>
    %99 = arith.cmpf oeq, %95, %94 : vector<8x8xf32>
    %100 = arith.cmpi slt, %97, %96 : vector<8x8xi32>
    %101 = arith.andi %99, %100 : vector<8x8xi1>
    %102 = arith.ori %98, %101 : vector<8x8xi1>
    %103 = arith.select %102, %95, %94 : vector<8x8xi1>, vector<8x8xf32>
    %104 = arith.select %102, %97, %96 : vector<8x8xi1>, vector<8x8xi32>
    %105 = vector.extract_strided_slice %103 {offsets = [0, 0], sizes = [8, 4], strides = [1, 1]} : vector<8x8xf32> to vector<8x4xf32>
    %106 = vector.extract_strided_slice %103 {offsets = [0, 4], sizes = [8, 4], strides = [1, 1]} : vector<8x8xf32> to vector<8x4xf32>
    %107 = vector.extract_strided_slice %104 {offsets = [0, 0], sizes = [8, 4], strides = [1, 1]} : vector<8x8xi32> to vector<8x4xi32>
    %108 = vector.extract_strided_slice %104 {offsets = [0, 4], sizes = [8, 4], strides = [1, 1]} : vector<8x8xi32> to vector<8x4xi32>
    %109 = arith.cmpf ogt, %106, %105 : vector<8x4xf32>
    %110 = arith.cmpf oeq, %106, %105 : vector<8x4xf32>
    %111 = arith.cmpi slt, %108, %107 : vector<8x4xi32>
    %112 = arith.andi %110, %111 : vector<8x4xi1>
    %113 = arith.ori %109, %112 : vector<8x4xi1>
    %114 = arith.select %113, %106, %105 : vector<8x4xi1>, vector<8x4xf32>
    %115 = arith.select %113, %108, %107 : vector<8x4xi1>, vector<8x4xi32>
    %116 = vector.extract_strided_slice %114 {offsets = [0, 0], sizes = [8, 2], strides = [1, 1]} : vector<8x4xf32> to vector<8x2xf32>
    %117 = vector.extract_strided_slice %114 {offsets = [0, 2], sizes = [8, 2], strides = [1, 1]} : vector<8x4xf32> to vector<8x2xf32>
    %118 = vector.extract_strided_slice %115 {offsets = [0, 0], sizes = [8, 2], strides = [1, 1]} : vector<8x4xi32> to vector<8x2xi32>
    %119 = vector.extract_strided_slice %115 {offsets = [0, 2], sizes = [8, 2], strides = [1, 1]} : vector<8x4xi32> to vector<8x2xi32>
    %120 = arith.cmpf ogt, %117, %116 : vector<8x2xf32>
    %121 = arith.cmpf oeq, %117, %116 : vector<8x2xf32>
    %122 = arith.cmpi slt, %119, %118 : vector<8x2xi32>
    %123 = arith.andi %121, %122 : vector<8x2xi1>
    %124 = arith.ori %120, %123 : vector<8x2xi1>
    %125 = arith.select %124, %117, %116 : vector<8x2xi1>, vector<8x2xf32>
    %126 = arith.select %124, %119, %118 : vector<8x2xi1>, vector<8x2xi32>
    %127 = vector.extract_strided_slice %125 {offsets = [0, 0], sizes = [8, 1], strides = [1, 1]} : vector<8x2xf32> to vector<8x1xf32>
    %128 = vector.extract_strided_slice %125 {offsets = [0, 1], sizes = [8, 1], strides = [1, 1]} : vector<8x2xf32> to vector<8x1xf32>
    %129 = vector.extract_strided_slice %126 {offsets = [0, 0], sizes = [8, 1], strides = [1, 1]} : vector<8x2xi32> to vector<8x1xi32>
    %130 = vector.extract_strided_slice %126 {offsets = [0, 1], sizes = [8, 1], strides = [1, 1]} : vector<8x2xi32> to vector<8x1xi32>
    %131 = arith.cmpf ogt, %128, %127 : vector<8x1xf32>
    %132 = arith.cmpf oeq, %128, %127 : vector<8x1xf32>
    %133 = arith.cmpi slt, %130, %129 : vector<8x1xi32>
    %134 = arith.andi %132, %133 : vector<8x1xi1>
    %135 = arith.ori %131, %134 : vector<8x1xi1>
    %136 = arith.select %135, %130, %129 : vector<8x1xi1>, vector<8x1xi32>
    %137 = vector.broadcast %136 : vector<8x1xi32> to vector<8x16xi32>
    %138 = arith.cmpi eq, %20, %137 : vector<8x16xi32>
    %139 = arith.extui %138 : vector<8x16xi1> to vector<8x16xi32>
    %140 = arith.sitofp %139 : vector<8x16xi32> to vector<8x16xf32>
    %141 = arith.truncf %140 : vector<8x16xf32> to vector<8x16xbf16>
    %cst_24 = arith.constant dense<0.000000e+00> : vector<8x128xf32>
    %142 = tpu.matmul %141, %9, %cst_24 {dimension_numbers = #tpu.dot_dimension_numbers<[1], [0], [0], [1], [0, 0, 1, 1], [], []>} : vector<8x16xbf16>, vector<16x128xbf16>, vector<8x128xf32> -> vector<8x128xf32>
    %143 = arith.addf %142, %90 : vector<8x128xf32>
    %144 = arith.addf %143, %54 : vector<8x128xf32>
    %145 = arith.negf %144 : vector<8x128xf32>
    %146 = math.exp %145 : vector<8x128xf32>
    %cst_25 = arith.constant 1.000000e+00 : f32
    %147 = vector.broadcast %cst_25 : f32 to vector<8x128xf32>
    %148 = arith.addf %147, %146 : vector<8x128xf32>
    %149 = arith.divf %147, %148 : vector<8x128xf32>
    %150 = vector.extract_strided_slice %149 {offsets = [0, 0], sizes = [8, 32], strides = [1, 1]} : vector<8x128xf32> to vector<8x32xf32>
    %151 = vector.extract_strided_slice %149 {offsets = [0, 32], sizes = [8, 32], strides = [1, 1]} : vector<8x128xf32> to vector<8x32xf32>
    %152 = vector.extract_strided_slice %149 {offsets = [0, 64], sizes = [8, 32], strides = [1, 1]} : vector<8x128xf32> to vector<8x32xf32>
    %cst_26 = arith.constant 2.000000e+00 : f32
    %153 = vector.broadcast %cst_26 : f32 to vector<8x32xf32>
    %154 = arith.mulf %153, %152 : vector<8x32xf32>
    %cst_27 = arith.constant 1.000000e+00 : f32
    %155 = vector.broadcast %cst_27 : f32 to vector<8x32xf32>
    %156 = arith.subf %154, %155 : vector<8x32xf32>
    %157 = vector.extract_strided_slice %149 {offsets = [0, 96], sizes = [8, 32], strides = [1, 1]} : vector<8x128xf32> to vector<8x32xf32>
    %158 = arith.mulf %151, %85 : vector<8x32xf32>
    %159 = arith.mulf %150, %156 : vector<8x32xf32>
    %160 = arith.addf %158, %159 : vector<8x32xf32>
    %161 = math.tanh %160 : vector<8x32xf32>
    %162 = arith.mulf %157, %161 : vector<8x32xf32>
    %163 = arith.truncf %162 : vector<8x32xf32> to vector<8x32xbf16>
    %cst_28 = arith.constant dense<0.000000e+00> : vector<8x144xf32>
    %164 = tpu.matmul %163, %16, %cst_28 {dimension_numbers = #tpu.dot_dimension_numbers<[1], [0], [0], [1], [0, 0, 1, 1], [], []>} : vector<8x32xbf16>, vector<32x144xbf16>, vector<8x144xf32> -> vector<8x144xf32>
    %165 = vector.extract_strided_slice %164 {offsets = [0, 0], sizes = [8, 128], strides = [1, 1]} : vector<8x144xf32> to vector<8x128xf32>
    %166 = vector.extract_strided_slice %164 {offsets = [0, 128], sizes = [8, 16], strides = [1, 1]} : vector<8x144xf32> to vector<8x16xf32>
    %167 = arith.addf %166, %19 : vector<8x16xf32>
    %168 = tpu.iota {dimensions = array<i32: 1>} : vector<8x16xi32>
    %169 = vector.extract_strided_slice %167 {offsets = [0, 0], sizes = [8, 8], strides = [1, 1]} : vector<8x16xf32> to vector<8x8xf32>
    %170 = vector.extract_strided_slice %167 {offsets = [0, 8], sizes = [8, 8], strides = [1, 1]} : vector<8x16xf32> to vector<8x8xf32>
    %171 = vector.extract_strided_slice %168 {offsets = [0, 0], sizes = [8, 8], strides = [1, 1]} : vector<8x16xi32> to vector<8x8xi32>
    %172 = vector.extract_strided_slice %168 {offsets = [0, 8], sizes = [8, 8], strides = [1, 1]} : vector<8x16xi32> to vector<8x8xi32>
    %173 = arith.cmpf ogt, %170, %169 : vector<8x8xf32>
    %174 = arith.cmpf oeq, %170, %169 : vector<8x8xf32>
    %175 = arith.cmpi slt, %172, %171 : vector<8x8xi32>
    %176 = arith.andi %174, %175 : vector<8x8xi1>
    %177 = arith.ori %173, %176 : vector<8x8xi1>
    %178 = arith.select %177, %170, %169 : vector<8x8xi1>, vector<8x8xf32>
    %179 = arith.select %177, %172, %171 : vector<8x8xi1>, vector<8x8xi32>
    %180 = vector.extract_strided_slice %178 {offsets = [0, 0], sizes = [8, 4], strides = [1, 1]} : vector<8x8xf32> to vector<8x4xf32>
    %181 = vector.extract_strided_slice %178 {offsets = [0, 4], sizes = [8, 4], strides = [1, 1]} : vector<8x8xf32> to vector<8x4xf32>
    %182 = vector.extract_strided_slice %179 {offsets = [0, 0], sizes = [8, 4], strides = [1, 1]} : vector<8x8xi32> to vector<8x4xi32>
    %183 = vector.extract_strided_slice %179 {offsets = [0, 4], sizes = [8, 4], strides = [1, 1]} : vector<8x8xi32> to vector<8x4xi32>
    %184 = arith.cmpf ogt, %181, %180 : vector<8x4xf32>
    %185 = arith.cmpf oeq, %181, %180 : vector<8x4xf32>
    %186 = arith.cmpi slt, %183, %182 : vector<8x4xi32>
    %187 = arith.andi %185, %186 : vector<8x4xi1>
    %188 = arith.ori %184, %187 : vector<8x4xi1>
    %189 = arith.select %188, %181, %180 : vector<8x4xi1>, vector<8x4xf32>
    %190 = arith.select %188, %183, %182 : vector<8x4xi1>, vector<8x4xi32>
    %191 = vector.extract_strided_slice %189 {offsets = [0, 0], sizes = [8, 2], strides = [1, 1]} : vector<8x4xf32> to vector<8x2xf32>
    %192 = vector.extract_strided_slice %189 {offsets = [0, 2], sizes = [8, 2], strides = [1, 1]} : vector<8x4xf32> to vector<8x2xf32>
    %193 = vector.extract_strided_slice %190 {offsets = [0, 0], sizes = [8, 2], strides = [1, 1]} : vector<8x4xi32> to vector<8x2xi32>
    %194 = vector.extract_strided_slice %190 {offsets = [0, 2], sizes = [8, 2], strides = [1, 1]} : vector<8x4xi32> to vector<8x2xi32>
    %195 = arith.cmpf ogt, %192, %191 : vector<8x2xf32>
    %196 = arith.cmpf oeq, %192, %191 : vector<8x2xf32>
    %197 = arith.cmpi slt, %194, %193 : vector<8x2xi32>
    %198 = arith.andi %196, %197 : vector<8x2xi1>
    %199 = arith.ori %195, %198 : vector<8x2xi1>
    %200 = arith.select %199, %192, %191 : vector<8x2xi1>, vector<8x2xf32>
    %201 = arith.select %199, %194, %193 : vector<8x2xi1>, vector<8x2xi32>
    %202 = vector.extract_strided_slice %200 {offsets = [0, 0], sizes = [8, 1], strides = [1, 1]} : vector<8x2xf32> to vector<8x1xf32>
    %203 = vector.extract_strided_slice %200 {offsets = [0, 1], sizes = [8, 1], strides = [1, 1]} : vector<8x2xf32> to vector<8x1xf32>
    %204 = vector.extract_strided_slice %201 {offsets = [0, 0], sizes = [8, 1], strides = [1, 1]} : vector<8x2xi32> to vector<8x1xi32>
    %205 = vector.extract_strided_slice %201 {offsets = [0, 1], sizes = [8, 1], strides = [1, 1]} : vector<8x2xi32> to vector<8x1xi32>
    %206 = arith.cmpf ogt, %203, %202 : vector<8x1xf32>
    %207 = arith.cmpf oeq, %203, %202 : vector<8x1xf32>
    %208 = arith.cmpi slt, %205, %204 : vector<8x1xi32>
    %209 = arith.andi %207, %208 : vector<8x1xi1>
    %210 = arith.ori %206, %209 : vector<8x1xi1>
    %211 = arith.select %210, %205, %204 : vector<8x1xi1>, vector<8x1xi32>
    %212 = vector.broadcast %211 : vector<8x1xi32> to vector<8x16xi32>
    %213 = arith.cmpi eq, %20, %212 : vector<8x16xi32>
    %214 = arith.extui %213 : vector<8x16xi1> to vector<8x16xi32>
    %215 = arith.sitofp %214 : vector<8x16xi32> to vector<8x16xf32>
    %216 = arith.truncf %215 : vector<8x16xf32> to vector<8x16xbf16>
    %cst_29 = arith.constant dense<0.000000e+00> : vector<8x128xf32>
    %217 = tpu.matmul %216, %9, %cst_29 {dimension_numbers = #tpu.dot_dimension_numbers<[1], [0], [0], [1], [0, 0, 1, 1], [], []>} : vector<8x16xbf16>, vector<16x128xbf16>, vector<8x128xf32> -> vector<8x128xf32>
    %218 = arith.addf %217, %165 : vector<8x128xf32>
    %219 = arith.addf %218, %54 : vector<8x128xf32>
    %220 = arith.negf %219 : vector<8x128xf32>
    %221 = math.exp %220 : vector<8x128xf32>
    %cst_30 = arith.constant 1.000000e+00 : f32
    %222 = vector.broadcast %cst_30 : f32 to vector<8x128xf32>
    %223 = arith.addf %222, %221 : vector<8x128xf32>
    %224 = arith.divf %222, %223 : vector<8x128xf32>
    %225 = vector.extract_strided_slice %224 {offsets = [0, 0], sizes = [8, 32], strides = [1, 1]} : vector<8x128xf32> to vector<8x32xf32>
    %226 = vector.extract_strided_slice %224 {offsets = [0, 32], sizes = [8, 32], strides = [1, 1]} : vector<8x128xf32> to vector<8x32xf32>
    %227 = vector.extract_strided_slice %224 {offsets = [0, 64], sizes = [8, 32], strides = [1, 1]} : vector<8x128xf32> to vector<8x32xf32>
    %cst_31 = arith.constant 2.000000e+00 : f32
    %228 = vector.broadcast %cst_31 : f32 to vector<8x32xf32>
    %229 = arith.mulf %228, %227 : vector<8x32xf32>
    %cst_32 = arith.constant 1.000000e+00 : f32
    %230 = vector.broadcast %cst_32 : f32 to vector<8x32xf32>
    %231 = arith.subf %229, %230 : vector<8x32xf32>
    %232 = vector.extract_strided_slice %224 {offsets = [0, 96], sizes = [8, 32], strides = [1, 1]} : vector<8x128xf32> to vector<8x32xf32>
    %233 = arith.mulf %226, %160 : vector<8x32xf32>
    %234 = arith.mulf %225, %231 : vector<8x32xf32>
    %235 = arith.addf %233, %234 : vector<8x32xf32>
    %236 = math.tanh %235 : vector<8x32xf32>
    %237 = arith.mulf %232, %236 : vector<8x32xf32>
    %238 = arith.truncf %237 : vector<8x32xf32> to vector<8x32xbf16>
    %cst_33 = arith.constant dense<0.000000e+00> : vector<8x144xf32>
    %239 = tpu.matmul %238, %16, %cst_33 {dimension_numbers = #tpu.dot_dimension_numbers<[1], [0], [0], [1], [0, 0, 1, 1], [], []>} : vector<8x32xbf16>, vector<32x144xbf16>, vector<8x144xf32> -> vector<8x144xf32>
    %240 = vector.extract_strided_slice %239 {offsets = [0, 0], sizes = [8, 128], strides = [1, 1]} : vector<8x144xf32> to vector<8x128xf32>
    %241 = vector.extract_strided_slice %239 {offsets = [0, 128], sizes = [8, 16], strides = [1, 1]} : vector<8x144xf32> to vector<8x16xf32>
    %242 = arith.addf %241, %19 : vector<8x16xf32>
    %243 = tpu.iota {dimensions = array<i32: 1>} : vector<8x16xi32>
    %244 = vector.extract_strided_slice %242 {offsets = [0, 0], sizes = [8, 8], strides = [1, 1]} : vector<8x16xf32> to vector<8x8xf32>
    %245 = vector.extract_strided_slice %242 {offsets = [0, 8], sizes = [8, 8], strides = [1, 1]} : vector<8x16xf32> to vector<8x8xf32>
    %246 = vector.extract_strided_slice %243 {offsets = [0, 0], sizes = [8, 8], strides = [1, 1]} : vector<8x16xi32> to vector<8x8xi32>
    %247 = vector.extract_strided_slice %243 {offsets = [0, 8], sizes = [8, 8], strides = [1, 1]} : vector<8x16xi32> to vector<8x8xi32>
    %248 = arith.cmpf ogt, %245, %244 : vector<8x8xf32>
    %249 = arith.cmpf oeq, %245, %244 : vector<8x8xf32>
    %250 = arith.cmpi slt, %247, %246 : vector<8x8xi32>
    %251 = arith.andi %249, %250 : vector<8x8xi1>
    %252 = arith.ori %248, %251 : vector<8x8xi1>
    %253 = arith.select %252, %245, %244 : vector<8x8xi1>, vector<8x8xf32>
    %254 = arith.select %252, %247, %246 : vector<8x8xi1>, vector<8x8xi32>
    %255 = vector.extract_strided_slice %253 {offsets = [0, 0], sizes = [8, 4], strides = [1, 1]} : vector<8x8xf32> to vector<8x4xf32>
    %256 = vector.extract_strided_slice %253 {offsets = [0, 4], sizes = [8, 4], strides = [1, 1]} : vector<8x8xf32> to vector<8x4xf32>
    %257 = vector.extract_strided_slice %254 {offsets = [0, 0], sizes = [8, 4], strides = [1, 1]} : vector<8x8xi32> to vector<8x4xi32>
    %258 = vector.extract_strided_slice %254 {offsets = [0, 4], sizes = [8, 4], strides = [1, 1]} : vector<8x8xi32> to vector<8x4xi32>
    %259 = arith.cmpf ogt, %256, %255 : vector<8x4xf32>
    %260 = arith.cmpf oeq, %256, %255 : vector<8x4xf32>
    %261 = arith.cmpi slt, %258, %257 : vector<8x4xi32>
    %262 = arith.andi %260, %261 : vector<8x4xi1>
    %263 = arith.ori %259, %262 : vector<8x4xi1>
    %264 = arith.select %263, %256, %255 : vector<8x4xi1>, vector<8x4xf32>
    %265 = arith.select %263, %258, %257 : vector<8x4xi1>, vector<8x4xi32>
    %266 = vector.extract_strided_slice %264 {offsets = [0, 0], sizes = [8, 2], strides = [1, 1]} : vector<8x4xf32> to vector<8x2xf32>
    %267 = vector.extract_strided_slice %264 {offsets = [0, 2], sizes = [8, 2], strides = [1, 1]} : vector<8x4xf32> to vector<8x2xf32>
    %268 = vector.extract_strided_slice %265 {offsets = [0, 0], sizes = [8, 2], strides = [1, 1]} : vector<8x4xi32> to vector<8x2xi32>
    %269 = vector.extract_strided_slice %265 {offsets = [0, 2], sizes = [8, 2], strides = [1, 1]} : vector<8x4xi32> to vector<8x2xi32>
    %270 = arith.cmpf ogt, %267, %266 : vector<8x2xf32>
    %271 = arith.cmpf oeq, %267, %266 : vector<8x2xf32>
    %272 = arith.cmpi slt, %269, %268 : vector<8x2xi32>
    %273 = arith.andi %271, %272 : vector<8x2xi1>
    %274 = arith.ori %270, %273 : vector<8x2xi1>
    %275 = arith.select %274, %267, %266 : vector<8x2xi1>, vector<8x2xf32>
    %276 = arith.select %274, %269, %268 : vector<8x2xi1>, vector<8x2xi32>
    %277 = vector.extract_strided_slice %275 {offsets = [0, 0], sizes = [8, 1], strides = [1, 1]} : vector<8x2xf32> to vector<8x1xf32>
    %278 = vector.extract_strided_slice %275 {offsets = [0, 1], sizes = [8, 1], strides = [1, 1]} : vector<8x2xf32> to vector<8x1xf32>
    %279 = vector.extract_strided_slice %276 {offsets = [0, 0], sizes = [8, 1], strides = [1, 1]} : vector<8x2xi32> to vector<8x1xi32>
    %280 = vector.extract_strided_slice %276 {offsets = [0, 1], sizes = [8, 1], strides = [1, 1]} : vector<8x2xi32> to vector<8x1xi32>
    %281 = arith.cmpf ogt, %278, %277 : vector<8x1xf32>
    %282 = arith.cmpf oeq, %278, %277 : vector<8x1xf32>
    %283 = arith.cmpi slt, %280, %279 : vector<8x1xi32>
    %284 = arith.andi %282, %283 : vector<8x1xi1>
    %285 = arith.ori %281, %284 : vector<8x1xi1>
    %286 = arith.select %285, %280, %279 : vector<8x1xi1>, vector<8x1xi32>
    %287 = vector.broadcast %286 : vector<8x1xi32> to vector<8x16xi32>
    %288 = arith.cmpi eq, %20, %287 : vector<8x16xi32>
    %289 = arith.extui %288 : vector<8x16xi1> to vector<8x16xi32>
    %290 = arith.sitofp %289 : vector<8x16xi32> to vector<8x16xf32>
    %291 = arith.truncf %290 : vector<8x16xf32> to vector<8x16xbf16>
    %cst_34 = arith.constant dense<0.000000e+00> : vector<8x128xf32>
    %292 = tpu.matmul %291, %9, %cst_34 {dimension_numbers = #tpu.dot_dimension_numbers<[1], [0], [0], [1], [0, 0, 1, 1], [], []>} : vector<8x16xbf16>, vector<16x128xbf16>, vector<8x128xf32> -> vector<8x128xf32>
    %293 = arith.addf %292, %240 : vector<8x128xf32>
    %294 = arith.addf %293, %54 : vector<8x128xf32>
    %295 = arith.negf %294 : vector<8x128xf32>
    %296 = math.exp %295 : vector<8x128xf32>
    %cst_35 = arith.constant 1.000000e+00 : f32
    %297 = vector.broadcast %cst_35 : f32 to vector<8x128xf32>
    %298 = arith.addf %297, %296 : vector<8x128xf32>
    %299 = arith.divf %297, %298 : vector<8x128xf32>
    %300 = vector.extract_strided_slice %299 {offsets = [0, 0], sizes = [8, 32], strides = [1, 1]} : vector<8x128xf32> to vector<8x32xf32>
    %301 = vector.extract_strided_slice %299 {offsets = [0, 32], sizes = [8, 32], strides = [1, 1]} : vector<8x128xf32> to vector<8x32xf32>
    %302 = vector.extract_strided_slice %299 {offsets = [0, 64], sizes = [8, 32], strides = [1, 1]} : vector<8x128xf32> to vector<8x32xf32>
    %cst_36 = arith.constant 2.000000e+00 : f32
    %303 = vector.broadcast %cst_36 : f32 to vector<8x32xf32>
    %304 = arith.mulf %303, %302 : vector<8x32xf32>
    %cst_37 = arith.constant 1.000000e+00 : f32
    %305 = vector.broadcast %cst_37 : f32 to vector<8x32xf32>
    %306 = arith.subf %304, %305 : vector<8x32xf32>
    %307 = vector.extract_strided_slice %299 {offsets = [0, 96], sizes = [8, 32], strides = [1, 1]} : vector<8x128xf32> to vector<8x32xf32>
    %308 = arith.mulf %301, %235 : vector<8x32xf32>
    %309 = arith.mulf %300, %306 : vector<8x32xf32>
    %310 = arith.addf %308, %309 : vector<8x32xf32>
    %311 = math.tanh %310 : vector<8x32xf32>
    %312 = arith.mulf %307, %311 : vector<8x32xf32>
    %313 = arith.truncf %312 : vector<8x32xf32> to vector<8x32xbf16>
    %cst_38 = arith.constant dense<0.000000e+00> : vector<8x144xf32>
    %314 = tpu.matmul %313, %16, %cst_38 {dimension_numbers = #tpu.dot_dimension_numbers<[1], [0], [0], [1], [0, 0, 1, 1], [], []>} : vector<8x32xbf16>, vector<32x144xbf16>, vector<8x144xf32> -> vector<8x144xf32>
    %315 = vector.extract_strided_slice %314 {offsets = [0, 128], sizes = [8, 16], strides = [1, 1]} : vector<8x144xf32> to vector<8x16xf32>
    %316 = arith.addf %315, %19 : vector<8x16xf32>
    %317 = tpu.iota {dimensions = array<i32: 1>} : vector<8x16xi32>
    %318 = vector.extract_strided_slice %316 {offsets = [0, 0], sizes = [8, 8], strides = [1, 1]} : vector<8x16xf32> to vector<8x8xf32>
    %319 = vector.extract_strided_slice %316 {offsets = [0, 8], sizes = [8, 8], strides = [1, 1]} : vector<8x16xf32> to vector<8x8xf32>
    %320 = vector.extract_strided_slice %317 {offsets = [0, 0], sizes = [8, 8], strides = [1, 1]} : vector<8x16xi32> to vector<8x8xi32>
    %321 = vector.extract_strided_slice %317 {offsets = [0, 8], sizes = [8, 8], strides = [1, 1]} : vector<8x16xi32> to vector<8x8xi32>
    %322 = arith.cmpf ogt, %319, %318 : vector<8x8xf32>
    %323 = arith.cmpf oeq, %319, %318 : vector<8x8xf32>
    %324 = arith.cmpi slt, %321, %320 : vector<8x8xi32>
    %325 = arith.andi %323, %324 : vector<8x8xi1>
    %326 = arith.ori %322, %325 : vector<8x8xi1>
    %327 = arith.select %326, %319, %318 : vector<8x8xi1>, vector<8x8xf32>
    %328 = arith.select %326, %321, %320 : vector<8x8xi1>, vector<8x8xi32>
    %329 = vector.extract_strided_slice %327 {offsets = [0, 0], sizes = [8, 4], strides = [1, 1]} : vector<8x8xf32> to vector<8x4xf32>
    %330 = vector.extract_strided_slice %327 {offsets = [0, 4], sizes = [8, 4], strides = [1, 1]} : vector<8x8xf32> to vector<8x4xf32>
    %331 = vector.extract_strided_slice %328 {offsets = [0, 0], sizes = [8, 4], strides = [1, 1]} : vector<8x8xi32> to vector<8x4xi32>
    %332 = vector.extract_strided_slice %328 {offsets = [0, 4], sizes = [8, 4], strides = [1, 1]} : vector<8x8xi32> to vector<8x4xi32>
    %333 = arith.cmpf ogt, %330, %329 : vector<8x4xf32>
    %334 = arith.cmpf oeq, %330, %329 : vector<8x4xf32>
    %335 = arith.cmpi slt, %332, %331 : vector<8x4xi32>
    %336 = arith.andi %334, %335 : vector<8x4xi1>
    %337 = arith.ori %333, %336 : vector<8x4xi1>
    %338 = arith.select %337, %330, %329 : vector<8x4xi1>, vector<8x4xf32>
    %339 = arith.select %337, %332, %331 : vector<8x4xi1>, vector<8x4xi32>
    %340 = vector.extract_strided_slice %338 {offsets = [0, 0], sizes = [8, 2], strides = [1, 1]} : vector<8x4xf32> to vector<8x2xf32>
    %341 = vector.extract_strided_slice %338 {offsets = [0, 2], sizes = [8, 2], strides = [1, 1]} : vector<8x4xf32> to vector<8x2xf32>
    %342 = vector.extract_strided_slice %339 {offsets = [0, 0], sizes = [8, 2], strides = [1, 1]} : vector<8x4xi32> to vector<8x2xi32>
    %343 = vector.extract_strided_slice %339 {offsets = [0, 2], sizes = [8, 2], strides = [1, 1]} : vector<8x4xi32> to vector<8x2xi32>
    %344 = arith.cmpf ogt, %341, %340 : vector<8x2xf32>
    %345 = arith.cmpf oeq, %341, %340 : vector<8x2xf32>
    %346 = arith.cmpi slt, %343, %342 : vector<8x2xi32>
    %347 = arith.andi %345, %346 : vector<8x2xi1>
    %348 = arith.ori %344, %347 : vector<8x2xi1>
    %349 = arith.select %348, %341, %340 : vector<8x2xi1>, vector<8x2xf32>
    %350 = arith.select %348, %343, %342 : vector<8x2xi1>, vector<8x2xi32>
    %351 = vector.extract_strided_slice %349 {offsets = [0, 0], sizes = [8, 1], strides = [1, 1]} : vector<8x2xf32> to vector<8x1xf32>
    %352 = vector.extract_strided_slice %349 {offsets = [0, 1], sizes = [8, 1], strides = [1, 1]} : vector<8x2xf32> to vector<8x1xf32>
    %353 = vector.extract_strided_slice %350 {offsets = [0, 0], sizes = [8, 1], strides = [1, 1]} : vector<8x2xi32> to vector<8x1xi32>
    %354 = vector.extract_strided_slice %350 {offsets = [0, 1], sizes = [8, 1], strides = [1, 1]} : vector<8x2xi32> to vector<8x1xi32>
    %355 = arith.cmpf ogt, %352, %351 : vector<8x1xf32>
    %356 = arith.cmpf oeq, %352, %351 : vector<8x1xf32>
    %357 = arith.cmpi slt, %354, %353 : vector<8x1xi32>
    %358 = arith.andi %356, %357 : vector<8x1xi1>
    %359 = arith.ori %355, %358 : vector<8x1xi1>
    %360 = arith.select %359, %354, %353 : vector<8x1xi1>, vector<8x1xi32>
    %361 = arith.truncf %50 : vector<8x32xf32> to vector<8x32xbf16>
    %cst_39 = arith.constant dense<0.000000e+00> : vector<8x128xf32>
    %362 = tpu.matmul %361, %4, %cst_39 {dimension_numbers = #tpu.dot_dimension_numbers<[1], [0], [0], [1], [0, 0, 1, 1], [], []>} : vector<8x32xbf16>, vector<32x128xbf16>, vector<8x128xf32> -> vector<8x128xf32>
    %363 = arith.addf %362, %7 : vector<8x128xf32>
    %364 = arith.negf %363 : vector<8x128xf32>
    %365 = math.exp %364 : vector<8x128xf32>
    %cst_40 = arith.constant 1.000000e+00 : f32
    %366 = vector.broadcast %cst_40 : f32 to vector<8x128xf32>
    %367 = arith.addf %366, %365 : vector<8x128xf32>
    %368 = arith.divf %366, %367 : vector<8x128xf32>
    %369 = vector.extract_strided_slice %368 {offsets = [0, 0], sizes = [8, 32], strides = [1, 1]} : vector<8x128xf32> to vector<8x32xf32>
    %370 = vector.extract_strided_slice %368 {offsets = [0, 32], sizes = [8, 32], strides = [1, 1]} : vector<8x128xf32> to vector<8x32xf32>
    %371 = vector.extract_strided_slice %368 {offsets = [0, 64], sizes = [8, 32], strides = [1, 1]} : vector<8x128xf32> to vector<8x32xf32>
    %cst_41 = arith.constant 2.000000e+00 : f32
    %372 = vector.broadcast %cst_41 : f32 to vector<8x32xf32>
    %373 = arith.mulf %372, %371 : vector<8x32xf32>
    %cst_42 = arith.constant 1.000000e+00 : f32
    %374 = vector.broadcast %cst_42 : f32 to vector<8x32xf32>
    %375 = arith.subf %373, %374 : vector<8x32xf32>
    %376 = vector.extract_strided_slice %368 {offsets = [0, 96], sizes = [8, 32], strides = [1, 1]} : vector<8x128xf32> to vector<8x32xf32>
    %377 = arith.mulf %370, %48 : vector<8x32xf32>
    %378 = arith.mulf %369, %375 : vector<8x32xf32>
    %379 = arith.addf %377, %378 : vector<8x32xf32>
    %380 = math.tanh %379 : vector<8x32xf32>
    %381 = arith.mulf %376, %380 : vector<8x32xf32>
    %382 = arith.truncf %381 : vector<8x32xf32> to vector<8x32xbf16>
    %cst_43 = arith.constant dense<0.000000e+00> : vector<8x192xf32>
    %383 = tpu.matmul %382, %11, %cst_43 {dimension_numbers = #tpu.dot_dimension_numbers<[1], [0], [0], [1], [0, 0, 1, 1], [], []>} : vector<8x32xbf16>, vector<32x192xbf16>, vector<8x192xf32> -> vector<8x192xf32>
    %384 = arith.addf %383, %14 : vector<8x192xf32>
    %385 = vector.extract_strided_slice %384 {offsets = [0, 0], sizes = [8, 128], strides = [1, 1]} : vector<8x192xf32> to vector<8x128xf32>
    %386 = vector.extract_strided_slice %384 {offsets = [0, 128], sizes = [8, 64], strides = [1, 1]} : vector<8x192xf32> to vector<8x64xf32>
    %387 = math.tanh %386 : vector<8x64xf32>
    %388 = vector.extract_strided_slice %387 {offsets = [0, 0], sizes = [8, 32], strides = [1, 1]} : vector<8x64xf32> to vector<8x32xf32>
    %389 = vector.extract_strided_slice %387 {offsets = [0, 32], sizes = [8, 32], strides = [1, 1]} : vector<8x64xf32> to vector<8x32xf32>
    %390 = arith.truncf %388 : vector<8x32xf32> to vector<8x32xbf16>
    %cst_44 = arith.constant dense<0.000000e+00> : vector<8x144xf32>
    %391 = tpu.matmul %390, %16, %cst_44 {dimension_numbers = #tpu.dot_dimension_numbers<[1], [0], [0], [1], [0, 0, 1, 1], [], []>} : vector<8x32xbf16>, vector<32x144xbf16>, vector<8x144xf32> -> vector<8x144xf32>
    %392 = vector.extract_strided_slice %391 {offsets = [0, 0], sizes = [8, 128], strides = [1, 1]} : vector<8x144xf32> to vector<8x128xf32>
    %393 = vector.broadcast %360 : vector<8x1xi32> to vector<8x16xi32>
    %394 = arith.cmpi eq, %20, %393 : vector<8x16xi32>
    %395 = arith.extui %394 : vector<8x16xi1> to vector<8x16xi32>
    %396 = arith.sitofp %395 : vector<8x16xi32> to vector<8x16xf32>
    %397 = arith.truncf %396 : vector<8x16xf32> to vector<8x16xbf16>
    %cst_45 = arith.constant dense<0.000000e+00> : vector<8x128xf32>
    %398 = tpu.matmul %397, %9, %cst_45 {dimension_numbers = #tpu.dot_dimension_numbers<[1], [0], [0], [1], [0, 0, 1, 1], [], []>} : vector<8x16xbf16>, vector<16x128xbf16>, vector<8x128xf32> -> vector<8x128xf32>
    %399 = arith.addf %398, %392 : vector<8x128xf32>
    %400 = arith.addf %399, %385 : vector<8x128xf32>
    %401 = arith.negf %400 : vector<8x128xf32>
    %402 = math.exp %401 : vector<8x128xf32>
    %cst_46 = arith.constant 1.000000e+00 : f32
    %403 = vector.broadcast %cst_46 : f32 to vector<8x128xf32>
    %404 = arith.addf %403, %402 : vector<8x128xf32>
    %405 = arith.divf %403, %404 : vector<8x128xf32>
    %406 = vector.extract_strided_slice %405 {offsets = [0, 0], sizes = [8, 32], strides = [1, 1]} : vector<8x128xf32> to vector<8x32xf32>
    %407 = vector.extract_strided_slice %405 {offsets = [0, 32], sizes = [8, 32], strides = [1, 1]} : vector<8x128xf32> to vector<8x32xf32>
    %408 = vector.extract_strided_slice %405 {offsets = [0, 64], sizes = [8, 32], strides = [1, 1]} : vector<8x128xf32> to vector<8x32xf32>
    %cst_47 = arith.constant 2.000000e+00 : f32
    %409 = vector.broadcast %cst_47 : f32 to vector<8x32xf32>
    %410 = arith.mulf %409, %408 : vector<8x32xf32>
    %cst_48 = arith.constant 1.000000e+00 : f32
    %411 = vector.broadcast %cst_48 : f32 to vector<8x32xf32>
    %412 = arith.subf %410, %411 : vector<8x32xf32>
    %413 = vector.extract_strided_slice %405 {offsets = [0, 96], sizes = [8, 32], strides = [1, 1]} : vector<8x128xf32> to vector<8x32xf32>
    %414 = arith.mulf %407, %389 : vector<8x32xf32>
    %415 = arith.mulf %406, %412 : vector<8x32xf32>
    %416 = arith.addf %414, %415 : vector<8x32xf32>
    %417 = math.tanh %416 : vector<8x32xf32>
    %418 = arith.mulf %413, %417 : vector<8x32xf32>
    %419 = arith.truncf %418 : vector<8x32xf32> to vector<8x32xbf16>
    %cst_49 = arith.constant dense<0.000000e+00> : vector<8x144xf32>
    %420 = tpu.matmul %419, %16, %cst_49 {dimension_numbers = #tpu.dot_dimension_numbers<[1], [0], [0], [1], [0, 0, 1, 1], [], []>} : vector<8x32xbf16>, vector<32x144xbf16>, vector<8x144xf32> -> vector<8x144xf32>
    %421 = vector.extract_strided_slice %420 {offsets = [0, 0], sizes = [8, 128], strides = [1, 1]} : vector<8x144xf32> to vector<8x128xf32>
    %422 = vector.extract_strided_slice %420 {offsets = [0, 128], sizes = [8, 16], strides = [1, 1]} : vector<8x144xf32> to vector<8x16xf32>
    %423 = arith.addf %422, %19 : vector<8x16xf32>
    %424 = tpu.iota {dimensions = array<i32: 1>} : vector<8x16xi32>
    %425 = vector.extract_strided_slice %423 {offsets = [0, 0], sizes = [8, 8], strides = [1, 1]} : vector<8x16xf32> to vector<8x8xf32>
    %426 = vector.extract_strided_slice %423 {offsets = [0, 8], sizes = [8, 8], strides = [1, 1]} : vector<8x16xf32> to vector<8x8xf32>
    %427 = vector.extract_strided_slice %424 {offsets = [0, 0], sizes = [8, 8], strides = [1, 1]} : vector<8x16xi32> to vector<8x8xi32>
    %428 = vector.extract_strided_slice %424 {offsets = [0, 8], sizes = [8, 8], strides = [1, 1]} : vector<8x16xi32> to vector<8x8xi32>
    %429 = arith.cmpf ogt, %426, %425 : vector<8x8xf32>
    %430 = arith.cmpf oeq, %426, %425 : vector<8x8xf32>
    %431 = arith.cmpi slt, %428, %427 : vector<8x8xi32>
    %432 = arith.andi %430, %431 : vector<8x8xi1>
    %433 = arith.ori %429, %432 : vector<8x8xi1>
    %434 = arith.select %433, %426, %425 : vector<8x8xi1>, vector<8x8xf32>
    %435 = arith.select %433, %428, %427 : vector<8x8xi1>, vector<8x8xi32>
    %436 = vector.extract_strided_slice %434 {offsets = [0, 0], sizes = [8, 4], strides = [1, 1]} : vector<8x8xf32> to vector<8x4xf32>
    %437 = vector.extract_strided_slice %434 {offsets = [0, 4], sizes = [8, 4], strides = [1, 1]} : vector<8x8xf32> to vector<8x4xf32>
    %438 = vector.extract_strided_slice %435 {offsets = [0, 0], sizes = [8, 4], strides = [1, 1]} : vector<8x8xi32> to vector<8x4xi32>
    %439 = vector.extract_strided_slice %435 {offsets = [0, 4], sizes = [8, 4], strides = [1, 1]} : vector<8x8xi32> to vector<8x4xi32>
    %440 = arith.cmpf ogt, %437, %436 : vector<8x4xf32>
    %441 = arith.cmpf oeq, %437, %436 : vector<8x4xf32>
    %442 = arith.cmpi slt, %439, %438 : vector<8x4xi32>
    %443 = arith.andi %441, %442 : vector<8x4xi1>
    %444 = arith.ori %440, %443 : vector<8x4xi1>
    %445 = arith.select %444, %437, %436 : vector<8x4xi1>, vector<8x4xf32>
    %446 = arith.select %444, %439, %438 : vector<8x4xi1>, vector<8x4xi32>
    %447 = vector.extract_strided_slice %445 {offsets = [0, 0], sizes = [8, 2], strides = [1, 1]} : vector<8x4xf32> to vector<8x2xf32>
    %448 = vector.extract_strided_slice %445 {offsets = [0, 2], sizes = [8, 2], strides = [1, 1]} : vector<8x4xf32> to vector<8x2xf32>
    %449 = vector.extract_strided_slice %446 {offsets = [0, 0], sizes = [8, 2], strides = [1, 1]} : vector<8x4xi32> to vector<8x2xi32>
    %450 = vector.extract_strided_slice %446 {offsets = [0, 2], sizes = [8, 2], strides = [1, 1]} : vector<8x4xi32> to vector<8x2xi32>
    %451 = arith.cmpf ogt, %448, %447 : vector<8x2xf32>
    %452 = arith.cmpf oeq, %448, %447 : vector<8x2xf32>
    %453 = arith.cmpi slt, %450, %449 : vector<8x2xi32>
    %454 = arith.andi %452, %453 : vector<8x2xi1>
    %455 = arith.ori %451, %454 : vector<8x2xi1>
    %456 = arith.select %455, %448, %447 : vector<8x2xi1>, vector<8x2xf32>
    %457 = arith.select %455, %450, %449 : vector<8x2xi1>, vector<8x2xi32>
    %458 = vector.extract_strided_slice %456 {offsets = [0, 0], sizes = [8, 1], strides = [1, 1]} : vector<8x2xf32> to vector<8x1xf32>
    %459 = vector.extract_strided_slice %456 {offsets = [0, 1], sizes = [8, 1], strides = [1, 1]} : vector<8x2xf32> to vector<8x1xf32>
    %460 = vector.extract_strided_slice %457 {offsets = [0, 0], sizes = [8, 1], strides = [1, 1]} : vector<8x2xi32> to vector<8x1xi32>
    %461 = vector.extract_strided_slice %457 {offsets = [0, 1], sizes = [8, 1], strides = [1, 1]} : vector<8x2xi32> to vector<8x1xi32>
    %462 = arith.cmpf ogt, %459, %458 : vector<8x1xf32>
    %463 = arith.cmpf oeq, %459, %458 : vector<8x1xf32>
    %464 = arith.cmpi slt, %461, %460 : vector<8x1xi32>
    %465 = arith.andi %463, %464 : vector<8x1xi1>
    %466 = arith.ori %462, %465 : vector<8x1xi1>
    %467 = arith.select %466, %461, %460 : vector<8x1xi1>, vector<8x1xi32>
    %468 = vector.broadcast %467 : vector<8x1xi32> to vector<8x16xi32>
    %469 = arith.cmpi eq, %20, %468 : vector<8x16xi32>
    %470 = arith.extui %469 : vector<8x16xi1> to vector<8x16xi32>
    %471 = arith.sitofp %470 : vector<8x16xi32> to vector<8x16xf32>
    %472 = arith.truncf %471 : vector<8x16xf32> to vector<8x16xbf16>
    %cst_50 = arith.constant dense<0.000000e+00> : vector<8x128xf32>
    %473 = tpu.matmul %472, %9, %cst_50 {dimension_numbers = #tpu.dot_dimension_numbers<[1], [0], [0], [1], [0, 0, 1, 1], [], []>} : vector<8x16xbf16>, vector<16x128xbf16>, vector<8x128xf32> -> vector<8x128xf32>
    %474 = arith.addf %473, %421 : vector<8x128xf32>
    %475 = arith.addf %474, %385 : vector<8x128xf32>
    %476 = arith.negf %475 : vector<8x128xf32>
    %477 = math.exp %476 : vector<8x128xf32>
    %cst_51 = arith.constant 1.000000e+00 : f32
    %478 = vector.broadcast %cst_51 : f32 to vector<8x128xf32>
    %479 = arith.addf %478, %477 : vector<8x128xf32>
    %480 = arith.divf %478, %479 : vector<8x128xf32>
    %481 = vector.extract_strided_slice %480 {offsets = [0, 0], sizes = [8, 32], strides = [1, 1]} : vector<8x128xf32> to vector<8x32xf32>
    %482 = vector.extract_strided_slice %480 {offsets = [0, 32], sizes = [8, 32], strides = [1, 1]} : vector<8x128xf32> to vector<8x32xf32>
    %483 = vector.extract_strided_slice %480 {offsets = [0, 64], sizes = [8, 32], strides = [1, 1]} : vector<8x128xf32> to vector<8x32xf32>
    %cst_52 = arith.constant 2.000000e+00 : f32
    %484 = vector.broadcast %cst_52 : f32 to vector<8x32xf32>
    %485 = arith.mulf %484, %483 : vector<8x32xf32>
    %cst_53 = arith.constant 1.000000e+00 : f32
    %486 = vector.broadcast %cst_53 : f32 to vector<8x32xf32>
    %487 = arith.subf %485, %486 : vector<8x32xf32>
    %488 = vector.extract_strided_slice %480 {offsets = [0, 96], sizes = [8, 32], strides = [1, 1]} : vector<8x128xf32> to vector<8x32xf32>
    %489 = arith.mulf %482, %416 : vector<8x32xf32>
    %490 = arith.mulf %481, %487 : vector<8x32xf32>
    %491 = arith.addf %489, %490 : vector<8x32xf32>
    %492 = math.tanh %491 : vector<8x32xf32>
    %493 = arith.mulf %488, %492 : vector<8x32xf32>
    %494 = arith.truncf %493 : vector<8x32xf32> to vector<8x32xbf16>
    %cst_54 = arith.constant dense<0.000000e+00> : vector<8x144xf32>
    %495 = tpu.matmul %494, %16, %cst_54 {dimension_numbers = #tpu.dot_dimension_numbers<[1], [0], [0], [1], [0, 0, 1, 1], [], []>} : vector<8x32xbf16>, vector<32x144xbf16>, vector<8x144xf32> -> vector<8x144xf32>
    %496 = vector.extract_strided_slice %495 {offsets = [0, 0], sizes = [8, 128], strides = [1, 1]} : vector<8x144xf32> to vector<8x128xf32>
    %497 = vector.extract_strided_slice %495 {offsets = [0, 128], sizes = [8, 16], strides = [1, 1]} : vector<8x144xf32> to vector<8x16xf32>
    %498 = arith.addf %497, %19 : vector<8x16xf32>
    %499 = tpu.iota {dimensions = array<i32: 1>} : vector<8x16xi32>
    %500 = vector.extract_strided_slice %498 {offsets = [0, 0], sizes = [8, 8], strides = [1, 1]} : vector<8x16xf32> to vector<8x8xf32>
    %501 = vector.extract_strided_slice %498 {offsets = [0, 8], sizes = [8, 8], strides = [1, 1]} : vector<8x16xf32> to vector<8x8xf32>
    %502 = vector.extract_strided_slice %499 {offsets = [0, 0], sizes = [8, 8], strides = [1, 1]} : vector<8x16xi32> to vector<8x8xi32>
    %503 = vector.extract_strided_slice %499 {offsets = [0, 8], sizes = [8, 8], strides = [1, 1]} : vector<8x16xi32> to vector<8x8xi32>
    %504 = arith.cmpf ogt, %501, %500 : vector<8x8xf32>
    %505 = arith.cmpf oeq, %501, %500 : vector<8x8xf32>
    %506 = arith.cmpi slt, %503, %502 : vector<8x8xi32>
    %507 = arith.andi %505, %506 : vector<8x8xi1>
    %508 = arith.ori %504, %507 : vector<8x8xi1>
    %509 = arith.select %508, %501, %500 : vector<8x8xi1>, vector<8x8xf32>
    %510 = arith.select %508, %503, %502 : vector<8x8xi1>, vector<8x8xi32>
    %511 = vector.extract_strided_slice %509 {offsets = [0, 0], sizes = [8, 4], strides = [1, 1]} : vector<8x8xf32> to vector<8x4xf32>
    %512 = vector.extract_strided_slice %509 {offsets = [0, 4], sizes = [8, 4], strides = [1, 1]} : vector<8x8xf32> to vector<8x4xf32>
    %513 = vector.extract_strided_slice %510 {offsets = [0, 0], sizes = [8, 4], strides = [1, 1]} : vector<8x8xi32> to vector<8x4xi32>
    %514 = vector.extract_strided_slice %510 {offsets = [0, 4], sizes = [8, 4], strides = [1, 1]} : vector<8x8xi32> to vector<8x4xi32>
    %515 = arith.cmpf ogt, %512, %511 : vector<8x4xf32>
    %516 = arith.cmpf oeq, %512, %511 : vector<8x4xf32>
    %517 = arith.cmpi slt, %514, %513 : vector<8x4xi32>
    %518 = arith.andi %516, %517 : vector<8x4xi1>
    %519 = arith.ori %515, %518 : vector<8x4xi1>
    %520 = arith.select %519, %512, %511 : vector<8x4xi1>, vector<8x4xf32>
    %521 = arith.select %519, %514, %513 : vector<8x4xi1>, vector<8x4xi32>
    %522 = vector.extract_strided_slice %520 {offsets = [0, 0], sizes = [8, 2], strides = [1, 1]} : vector<8x4xf32> to vector<8x2xf32>
    %523 = vector.extract_strided_slice %520 {offsets = [0, 2], sizes = [8, 2], strides = [1, 1]} : vector<8x4xf32> to vector<8x2xf32>
    %524 = vector.extract_strided_slice %521 {offsets = [0, 0], sizes = [8, 2], strides = [1, 1]} : vector<8x4xi32> to vector<8x2xi32>
    %525 = vector.extract_strided_slice %521 {offsets = [0, 2], sizes = [8, 2], strides = [1, 1]} : vector<8x4xi32> to vector<8x2xi32>
    %526 = arith.cmpf ogt, %523, %522 : vector<8x2xf32>
    %527 = arith.cmpf oeq, %523, %522 : vector<8x2xf32>
    %528 = arith.cmpi slt, %525, %524 : vector<8x2xi32>
    %529 = arith.andi %527, %528 : vector<8x2xi1>
    %530 = arith.ori %526, %529 : vector<8x2xi1>
    %531 = arith.select %530, %523, %522 : vector<8x2xi1>, vector<8x2xf32>
    %532 = arith.select %530, %525, %524 : vector<8x2xi1>, vector<8x2xi32>
    %533 = vector.extract_strided_slice %531 {offsets = [0, 0], sizes = [8, 1], strides = [1, 1]} : vector<8x2xf32> to vector<8x1xf32>
    %534 = vector.extract_strided_slice %531 {offsets = [0, 1], sizes = [8, 1], strides = [1, 1]} : vector<8x2xf32> to vector<8x1xf32>
    %535 = vector.extract_strided_slice %532 {offsets = [0, 0], sizes = [8, 1], strides = [1, 1]} : vector<8x2xi32> to vector<8x1xi32>
    %536 = vector.extract_strided_slice %532 {offsets = [0, 1], sizes = [8, 1], strides = [1, 1]} : vector<8x2xi32> to vector<8x1xi32>
    %537 = arith.cmpf ogt, %534, %533 : vector<8x1xf32>
    %538 = arith.cmpf oeq, %534, %533 : vector<8x1xf32>
    %539 = arith.cmpi slt, %536, %535 : vector<8x1xi32>
    %540 = arith.andi %538, %539 : vector<8x1xi1>
    %541 = arith.ori %537, %540 : vector<8x1xi1>
    %542 = arith.select %541, %536, %535 : vector<8x1xi1>, vector<8x1xi32>
    %543 = vector.broadcast %542 : vector<8x1xi32> to vector<8x16xi32>
    %544 = arith.cmpi eq, %20, %543 : vector<8x16xi32>
    %545 = arith.extui %544 : vector<8x16xi1> to vector<8x16xi32>
    %546 = arith.sitofp %545 : vector<8x16xi32> to vector<8x16xf32>
    %547 = arith.truncf %546 : vector<8x16xf32> to vector<8x16xbf16>
    %cst_55 = arith.constant dense<0.000000e+00> : vector<8x128xf32>
    %548 = tpu.matmul %547, %9, %cst_55 {dimension_numbers = #tpu.dot_dimension_numbers<[1], [0], [0], [1], [0, 0, 1, 1], [], []>} : vector<8x16xbf16>, vector<16x128xbf16>, vector<8x128xf32> -> vector<8x128xf32>
    %549 = arith.addf %548, %496 : vector<8x128xf32>
    %550 = arith.addf %549, %385 : vector<8x128xf32>
    %551 = arith.negf %550 : vector<8x128xf32>
    %552 = math.exp %551 : vector<8x128xf32>
    %cst_56 = arith.constant 1.000000e+00 : f32
    %553 = vector.broadcast %cst_56 : f32 to vector<8x128xf32>
    %554 = arith.addf %553, %552 : vector<8x128xf32>
    %555 = arith.divf %553, %554 : vector<8x128xf32>
    %556 = vector.extract_strided_slice %555 {offsets = [0, 0], sizes = [8, 32], strides = [1, 1]} : vector<8x128xf32> to vector<8x32xf32>
    %557 = vector.extract_strided_slice %555 {offsets = [0, 32], sizes = [8, 32], strides = [1, 1]} : vector<8x128xf32> to vector<8x32xf32>
    %558 = vector.extract_strided_slice %555 {offsets = [0, 64], sizes = [8, 32], strides = [1, 1]} : vector<8x128xf32> to vector<8x32xf32>
    %cst_57 = arith.constant 2.000000e+00 : f32
    %559 = vector.broadcast %cst_57 : f32 to vector<8x32xf32>
    %560 = arith.mulf %559, %558 : vector<8x32xf32>
    %cst_58 = arith.constant 1.000000e+00 : f32
    %561 = vector.broadcast %cst_58 : f32 to vector<8x32xf32>
    %562 = arith.subf %560, %561 : vector<8x32xf32>
    %563 = vector.extract_strided_slice %555 {offsets = [0, 96], sizes = [8, 32], strides = [1, 1]} : vector<8x128xf32> to vector<8x32xf32>
    %564 = arith.mulf %557, %491 : vector<8x32xf32>
    %565 = arith.mulf %556, %562 : vector<8x32xf32>
    %566 = arith.addf %564, %565 : vector<8x32xf32>
    %567 = math.tanh %566 : vector<8x32xf32>
    %568 = arith.mulf %563, %567 : vector<8x32xf32>
    %569 = arith.truncf %568 : vector<8x32xf32> to vector<8x32xbf16>
    %cst_59 = arith.constant dense<0.000000e+00> : vector<8x144xf32>
    %570 = tpu.matmul %569, %16, %cst_59 {dimension_numbers = #tpu.dot_dimension_numbers<[1], [0], [0], [1], [0, 0, 1, 1], [], []>} : vector<8x32xbf16>, vector<32x144xbf16>, vector<8x144xf32> -> vector<8x144xf32>
    %571 = vector.extract_strided_slice %570 {offsets = [0, 0], sizes = [8, 128], strides = [1, 1]} : vector<8x144xf32> to vector<8x128xf32>
    %572 = vector.extract_strided_slice %570 {offsets = [0, 128], sizes = [8, 16], strides = [1, 1]} : vector<8x144xf32> to vector<8x16xf32>
    %573 = arith.addf %572, %19 : vector<8x16xf32>
    %574 = tpu.iota {dimensions = array<i32: 1>} : vector<8x16xi32>
    %575 = vector.extract_strided_slice %573 {offsets = [0, 0], sizes = [8, 8], strides = [1, 1]} : vector<8x16xf32> to vector<8x8xf32>
    %576 = vector.extract_strided_slice %573 {offsets = [0, 8], sizes = [8, 8], strides = [1, 1]} : vector<8x16xf32> to vector<8x8xf32>
    %577 = vector.extract_strided_slice %574 {offsets = [0, 0], sizes = [8, 8], strides = [1, 1]} : vector<8x16xi32> to vector<8x8xi32>
    %578 = vector.extract_strided_slice %574 {offsets = [0, 8], sizes = [8, 8], strides = [1, 1]} : vector<8x16xi32> to vector<8x8xi32>
    %579 = arith.cmpf ogt, %576, %575 : vector<8x8xf32>
    %580 = arith.cmpf oeq, %576, %575 : vector<8x8xf32>
    %581 = arith.cmpi slt, %578, %577 : vector<8x8xi32>
    %582 = arith.andi %580, %581 : vector<8x8xi1>
    %583 = arith.ori %579, %582 : vector<8x8xi1>
    %584 = arith.select %583, %576, %575 : vector<8x8xi1>, vector<8x8xf32>
    %585 = arith.select %583, %578, %577 : vector<8x8xi1>, vector<8x8xi32>
    %586 = vector.extract_strided_slice %584 {offsets = [0, 0], sizes = [8, 4], strides = [1, 1]} : vector<8x8xf32> to vector<8x4xf32>
    %587 = vector.extract_strided_slice %584 {offsets = [0, 4], sizes = [8, 4], strides = [1, 1]} : vector<8x8xf32> to vector<8x4xf32>
    %588 = vector.extract_strided_slice %585 {offsets = [0, 0], sizes = [8, 4], strides = [1, 1]} : vector<8x8xi32> to vector<8x4xi32>
    %589 = vector.extract_strided_slice %585 {offsets = [0, 4], sizes = [8, 4], strides = [1, 1]} : vector<8x8xi32> to vector<8x4xi32>
    %590 = arith.cmpf ogt, %587, %586 : vector<8x4xf32>
    %591 = arith.cmpf oeq, %587, %586 : vector<8x4xf32>
    %592 = arith.cmpi slt, %589, %588 : vector<8x4xi32>
    %593 = arith.andi %591, %592 : vector<8x4xi1>
    %594 = arith.ori %590, %593 : vector<8x4xi1>
    %595 = arith.select %594, %587, %586 : vector<8x4xi1>, vector<8x4xf32>
    %596 = arith.select %594, %589, %588 : vector<8x4xi1>, vector<8x4xi32>
    %597 = vector.extract_strided_slice %595 {offsets = [0, 0], sizes = [8, 2], strides = [1, 1]} : vector<8x4xf32> to vector<8x2xf32>
    %598 = vector.extract_strided_slice %595 {offsets = [0, 2], sizes = [8, 2], strides = [1, 1]} : vector<8x4xf32> to vector<8x2xf32>
    %599 = vector.extract_strided_slice %596 {offsets = [0, 0], sizes = [8, 2], strides = [1, 1]} : vector<8x4xi32> to vector<8x2xi32>
    %600 = vector.extract_strided_slice %596 {offsets = [0, 2], sizes = [8, 2], strides = [1, 1]} : vector<8x4xi32> to vector<8x2xi32>
    %601 = arith.cmpf ogt, %598, %597 : vector<8x2xf32>
    %602 = arith.cmpf oeq, %598, %597 : vector<8x2xf32>
    %603 = arith.cmpi slt, %600, %599 : vector<8x2xi32>
    %604 = arith.andi %602, %603 : vector<8x2xi1>
    %605 = arith.ori %601, %604 : vector<8x2xi1>
    %606 = arith.select %605, %598, %597 : vector<8x2xi1>, vector<8x2xf32>
    %607 = arith.select %605, %600, %599 : vector<8x2xi1>, vector<8x2xi32>
    %608 = vector.extract_strided_slice %606 {offsets = [0, 0], sizes = [8, 1], strides = [1, 1]} : vector<8x2xf32> to vector<8x1xf32>
    %609 = vector.extract_strided_slice %606 {offsets = [0, 1], sizes = [8, 1], strides = [1, 1]} : vector<8x2xf32> to vector<8x1xf32>
    %610 = vector.extract_strided_slice %607 {offsets = [0, 0], sizes = [8, 1], strides = [1, 1]} : vector<8x2xi32> to vector<8x1xi32>
    %611 = vector.extract_strided_slice %607 {offsets = [0, 1], sizes = [8, 1], strides = [1, 1]} : vector<8x2xi32> to vector<8x1xi32>
    %612 = arith.cmpf ogt, %609, %608 : vector<8x1xf32>
    %613 = arith.cmpf oeq, %609, %608 : vector<8x1xf32>
    %614 = arith.cmpi slt, %611, %610 : vector<8x1xi32>
    %615 = arith.andi %613, %614 : vector<8x1xi1>
    %616 = arith.ori %612, %615 : vector<8x1xi1>
    %617 = arith.select %616, %611, %610 : vector<8x1xi1>, vector<8x1xi32>
    %618 = vector.broadcast %617 : vector<8x1xi32> to vector<8x16xi32>
    %619 = arith.cmpi eq, %20, %618 : vector<8x16xi32>
    %620 = arith.extui %619 : vector<8x16xi1> to vector<8x16xi32>
    %621 = arith.sitofp %620 : vector<8x16xi32> to vector<8x16xf32>
    %622 = arith.truncf %621 : vector<8x16xf32> to vector<8x16xbf16>
    %cst_60 = arith.constant dense<0.000000e+00> : vector<8x128xf32>
    %623 = tpu.matmul %622, %9, %cst_60 {dimension_numbers = #tpu.dot_dimension_numbers<[1], [0], [0], [1], [0, 0, 1, 1], [], []>} : vector<8x16xbf16>, vector<16x128xbf16>, vector<8x128xf32> -> vector<8x128xf32>
    %624 = arith.addf %623, %571 : vector<8x128xf32>
    %625 = arith.addf %624, %385 : vector<8x128xf32>
    %626 = arith.negf %625 : vector<8x128xf32>
    %627 = math.exp %626 : vector<8x128xf32>
    %cst_61 = arith.constant 1.000000e+00 : f32
    %628 = vector.broadcast %cst_61 : f32 to vector<8x128xf32>
    %629 = arith.addf %628, %627 : vector<8x128xf32>
    %630 = arith.divf %628, %629 : vector<8x128xf32>
    %631 = vector.extract_strided_slice %630 {offsets = [0, 0], sizes = [8, 32], strides = [1, 1]} : vector<8x128xf32> to vector<8x32xf32>
    %632 = vector.extract_strided_slice %630 {offsets = [0, 32], sizes = [8, 32], strides = [1, 1]} : vector<8x128xf32> to vector<8x32xf32>
    %633 = vector.extract_strided_slice %630 {offsets = [0, 64], sizes = [8, 32], strides = [1, 1]} : vector<8x128xf32> to vector<8x32xf32>
    %cst_62 = arith.constant 2.000000e+00 : f32
    %634 = vector.broadcast %cst_62 : f32 to vector<8x32xf32>
    %635 = arith.mulf %634, %633 : vector<8x32xf32>
    %cst_63 = arith.constant 1.000000e+00 : f32
    %636 = vector.broadcast %cst_63 : f32 to vector<8x32xf32>
    %637 = arith.subf %635, %636 : vector<8x32xf32>
    %638 = vector.extract_strided_slice %630 {offsets = [0, 96], sizes = [8, 32], strides = [1, 1]} : vector<8x128xf32> to vector<8x32xf32>
    %639 = arith.mulf %632, %566 : vector<8x32xf32>
    %640 = arith.mulf %631, %637 : vector<8x32xf32>
    %641 = arith.addf %639, %640 : vector<8x32xf32>
    %642 = math.tanh %641 : vector<8x32xf32>
    %643 = arith.mulf %638, %642 : vector<8x32xf32>
    %644 = arith.truncf %643 : vector<8x32xf32> to vector<8x32xbf16>
    %cst_64 = arith.constant dense<0.000000e+00> : vector<8x144xf32>
    %645 = tpu.matmul %644, %16, %cst_64 {dimension_numbers = #tpu.dot_dimension_numbers<[1], [0], [0], [1], [0, 0, 1, 1], [], []>} : vector<8x32xbf16>, vector<32x144xbf16>, vector<8x144xf32> -> vector<8x144xf32>
    %646 = vector.extract_strided_slice %645 {offsets = [0, 128], sizes = [8, 16], strides = [1, 1]} : vector<8x144xf32> to vector<8x16xf32>
    %647 = arith.addf %646, %19 : vector<8x16xf32>
    %648 = tpu.iota {dimensions = array<i32: 1>} : vector<8x16xi32>
    %649 = vector.extract_strided_slice %647 {offsets = [0, 0], sizes = [8, 8], strides = [1, 1]} : vector<8x16xf32> to vector<8x8xf32>
    %650 = vector.extract_strided_slice %647 {offsets = [0, 8], sizes = [8, 8], strides = [1, 1]} : vector<8x16xf32> to vector<8x8xf32>
    %651 = vector.extract_strided_slice %648 {offsets = [0, 0], sizes = [8, 8], strides = [1, 1]} : vector<8x16xi32> to vector<8x8xi32>
    %652 = vector.extract_strided_slice %648 {offsets = [0, 8], sizes = [8, 8], strides = [1, 1]} : vector<8x16xi32> to vector<8x8xi32>
    %653 = arith.cmpf ogt, %650, %649 : vector<8x8xf32>
    %654 = arith.cmpf oeq, %650, %649 : vector<8x8xf32>
    %655 = arith.cmpi slt, %652, %651 : vector<8x8xi32>
    %656 = arith.andi %654, %655 : vector<8x8xi1>
    %657 = arith.ori %653, %656 : vector<8x8xi1>
    %658 = arith.select %657, %650, %649 : vector<8x8xi1>, vector<8x8xf32>
    %659 = arith.select %657, %652, %651 : vector<8x8xi1>, vector<8x8xi32>
    %660 = vector.extract_strided_slice %658 {offsets = [0, 0], sizes = [8, 4], strides = [1, 1]} : vector<8x8xf32> to vector<8x4xf32>
    %661 = vector.extract_strided_slice %658 {offsets = [0, 4], sizes = [8, 4], strides = [1, 1]} : vector<8x8xf32> to vector<8x4xf32>
    %662 = vector.extract_strided_slice %659 {offsets = [0, 0], sizes = [8, 4], strides = [1, 1]} : vector<8x8xi32> to vector<8x4xi32>
    %663 = vector.extract_strided_slice %659 {offsets = [0, 4], sizes = [8, 4], strides = [1, 1]} : vector<8x8xi32> to vector<8x4xi32>
    %664 = arith.cmpf ogt, %661, %660 : vector<8x4xf32>
    %665 = arith.cmpf oeq, %661, %660 : vector<8x4xf32>
    %666 = arith.cmpi slt, %663, %662 : vector<8x4xi32>
    %667 = arith.andi %665, %666 : vector<8x4xi1>
    %668 = arith.ori %664, %667 : vector<8x4xi1>
    %669 = arith.select %668, %661, %660 : vector<8x4xi1>, vector<8x4xf32>
    %670 = arith.select %668, %663, %662 : vector<8x4xi1>, vector<8x4xi32>
    %671 = vector.extract_strided_slice %669 {offsets = [0, 0], sizes = [8, 2], strides = [1, 1]} : vector<8x4xf32> to vector<8x2xf32>
    %672 = vector.extract_strided_slice %669 {offsets = [0, 2], sizes = [8, 2], strides = [1, 1]} : vector<8x4xf32> to vector<8x2xf32>
    %673 = vector.extract_strided_slice %670 {offsets = [0, 0], sizes = [8, 2], strides = [1, 1]} : vector<8x4xi32> to vector<8x2xi32>
    %674 = vector.extract_strided_slice %670 {offsets = [0, 2], sizes = [8, 2], strides = [1, 1]} : vector<8x4xi32> to vector<8x2xi32>
    %675 = arith.cmpf ogt, %672, %671 : vector<8x2xf32>
    %676 = arith.cmpf oeq, %672, %671 : vector<8x2xf32>
    %677 = arith.cmpi slt, %674, %673 : vector<8x2xi32>
    %678 = arith.andi %676, %677 : vector<8x2xi1>
    %679 = arith.ori %675, %678 : vector<8x2xi1>
    %680 = arith.select %679, %672, %671 : vector<8x2xi1>, vector<8x2xf32>
    %681 = arith.select %679, %674, %673 : vector<8x2xi1>, vector<8x2xi32>
    %682 = vector.extract_strided_slice %680 {offsets = [0, 0], sizes = [8, 1], strides = [1, 1]} : vector<8x2xf32> to vector<8x1xf32>
    %683 = vector.extract_strided_slice %680 {offsets = [0, 1], sizes = [8, 1], strides = [1, 1]} : vector<8x2xf32> to vector<8x1xf32>
    %684 = vector.extract_strided_slice %681 {offsets = [0, 0], sizes = [8, 1], strides = [1, 1]} : vector<8x2xi32> to vector<8x1xi32>
    %685 = vector.extract_strided_slice %681 {offsets = [0, 1], sizes = [8, 1], strides = [1, 1]} : vector<8x2xi32> to vector<8x1xi32>
    %686 = arith.cmpf ogt, %683, %682 : vector<8x1xf32>
    %687 = arith.cmpf oeq, %683, %682 : vector<8x1xf32>
    %688 = arith.cmpi slt, %685, %684 : vector<8x1xi32>
    %689 = arith.andi %687, %688 : vector<8x1xi1>
    %690 = arith.ori %686, %689 : vector<8x1xi1>
    %691 = arith.select %690, %685, %684 : vector<8x1xi1>, vector<8x1xi32>
    %692 = tpu.concatenate %92, %167, %242, %316, %423, %498, %573, %647 in 1 : vector<8x16xf32>, vector<8x16xf32>, vector<8x16xf32>, vector<8x16xf32>, vector<8x16xf32>, vector<8x16xf32>, vector<8x16xf32>, vector<8x16xf32> -> vector<8x128xf32>
    %c0_65 = arith.constant 0 : index
    %c0_66 = arith.constant 0 : index
    %693 = vector.load %arg3[%c0_65, %c0_66] : memref<8x128xf32, #tpu.memory_space<vmem>>, vector<8x128xf32>
    tpu.vector_store %arg3[%c0_65, %c0_66], %692 {strides = array<i32>} : memref<8x128xf32, #tpu.memory_space<vmem>>, vector<8x128xf32>,
    %694 = tpu.concatenate %136, %211, %286, %360, %467, %542, %617, %691 in 1 : vector<8x1xi32>, vector<8x1xi32>, vector<8x1xi32>, vector<8x1xi32>, vector<8x1xi32>, vector<8x1xi32>, vector<8x1xi32>, vector<8x1xi32> -> vector<8x8xi32>
    %c0_67 = arith.constant 0 : index
    %c0_68 = arith.constant 0 : index
    %695 = vector.load %arg4[%c0_67, %c0_68] : memref<8x8xi32, #tpu.memory_space<vmem>>, vector<8x8xi32>
    tpu.vector_store %arg4[%c0_67, %c0_68], %694 {strides = array<i32>} : memref<8x8xi32, #tpu.memory_space<vmem>>, vector<8x8xi32>,
    return
  }
}

</mosaic_0001>

<bundles_post_ra>
// kernel: hierarchical_seq_decoder.1
= control target key start
LH: loop header
LB: loop body
LE: loop exit
PB: predicated region body
PF: predicated region fallthrough
CT: control target
= control target key end

     0   :  { %10 = vsyncpa [#allocation3], 0  ;;  %s2771_s0 = inlined_call_operand.vmem [shape: f32[8,32], index: 0, kind: input, shape index: {}]   ;;  %s2772_s1 = inlined_call_operand.hbm [shape: f32[176,256], index: 1, kind: input, shape index: {}]   ;;  %s2773_s2 = inlined_call_operand.vmem [shape: s32[8,1], index: 2, kind: input, shape index: {}]   ;;  %s2774_s3 = inlined_call_operand.vmem [shape: f32[8,128], index: 3, kind: output, shape index: {0}]   ;;  %s2775_s4 = inlined_call_operand.hbm [shape: s32[8,8], index: 4, kind: output, shape index: {1}]  }
   0x1   :  { %11 = vsyncpa [#allocation4], 0  ;;  %s2220_s15 = smov [#allocation2]   ;;  %s2172_s19 = scalar_lea.hbm %s2772_s1, 5632 }
   0x2   :  { %s19_s16 = sshll.u32 %s2220_s15, 4  ;;  %p2173_p0 = scmp.ne.s32.totalorder %s2772_s1, %s2172_s19  ;;  %s20_s16 = int_to_ptr.vmem [resolvable:$true] %s19_s16 }
   0x3   :  { %p2176_p1 = scmp.lt.u32.totalorder %s2172_s19, %s2772_s1 }
   0x5   :  { %p2178_p2 = pnand %p2176_p1, %p2173_p0 }
   0x7   :  { %2181 = shalt.err (!%p2178_p2)
}
   0x8   :  { %s2182_s24 = scalar_lea.vmem %s20_s16, 5632  ;;  %p2187_p4 = scmp.lt.s32.totalorder %s20_s16, %s20_s16 }
   0x9   :  { %p2183_p3 = scmp.ne.s32.totalorder %s20_s16, %s2182_s24  ;;  %p2188_p5 = scmp.lt.s32.totalorder %s2182_s24, %s2182_s24 }
   0xb   :  { %p2189_p6 = por %p2188_p5, %p2187_p4 }
   0xd   :  { %p2190_p7 = pnand %p2189_p6, %p2183_p3 }
   0xf   :  { %2193 = shalt.err (!%p2190_p7)
}
  0x10   :  { %s2221_s25 = smov 256   ;;  %s2222_s26 = smov 16  }
  0x11   :  { %25 = dma.hbm_to_vmem [thread:$0]  %s2772_s1, 5632, %s20_s16, [#allocation3], %s2221_s25, %s2221_s25, %s2222_s26  }
  0x12   :  { %2216 = dma.done.wait [#allocation3], 5632  }
  0x13   :  { %2217 = vsyncadd [#allocation3], 4294961664  ;;  %v2223_v0 = vmov 0.0   ;;  %vm2224_vm0 = vmmov 0   ;;  %v32_v1 = vld [vmem:[#allocation2] sm:$0xff]  ;;  %v33_v2 = vld [vmem:[#allocation2 + $0x10] sm:$0xff]  ;;  %v64_v59 = vlaneseq }
  0x14   :  { %2004 = vmatprep.subr.bf16.mxu0 %v2223_v0  ;;  %2008 = vmatprep.mubr.msk.bf16.mxu0 %vm2224_vm0, %v2223_v0  ;;  %v34_v3 = vld [vmem:[#allocation2 + $0x20] sm:$0xff]  ;;  %v36_v4 = vpack.c.bf16 %v33_v2, %v32_v1  ;;  %v35_v5 = vld [vmem:[#allocation2 + $0x30] sm:$0xff]  ;;  %vm91_vm1 = vcmask 261120   ;;  %s2226_s30 = smov 32   ;;  %v50_v40 = vld [vmem:[#allocation2 + $0xc8] sm:$0xff]  ;;  %v2227_v47 = vmov 0  }
  0x15   :  { %2012 = vmatprep.subr.bf16.mxu1 %v2223_v0  ;;  %2016 = vmatprep.mubr.msk.bf16.mxu1 %vm2224_vm0, %v2223_v0  ;;  %v37_v6 = vpack.c.bf16 %v35_v5, %v34_v3  ;;  %v89_v7 = vld [vmem:[%s2771_s0] sm:$0xff]  ;;  %v39_v9 = vld [vmem:[#allocation2 + $0x50] sm:$0xff]  ;;  %s2225_s0 = smov 64   ;;  %v52_v41 = vld [vmem:[#allocation2 + $0xd8] sm:$0xff]  ;;  %v2338_v60 = vand.u32 127, %v64_v59  ;;  %vm306_vm3 = vcmask 130048  }
  0x16   :  { %2005 = vmatpush3.bf16.msra.mxu0 %v36_v4  ;;  %v90_v8 = vpack.c.bf16 %v89_v7, %v89_v7  ;;  %v40_v10 = vld [vmem:[#allocation2 + $0x60] sm:$0xff]  ;;  %v41_v11 = vld [vmem:[#allocation2 + $0x70] sm:$0xff]  ;;  %v2311_v43 = vpack.c.bf16 %v52_v41, %v50_v40  ;;  %v54_v45 = vld [vmem:[#allocation2 + $0xe8] sm:$0xff]  ;;  %2102 = vset.pattern.permute.xlu0 %v2227_v47  ;;  %s2229_s7 = smov 4   ;;  %s2230_s8 = smov 2  }
  0x17   :  { %2006 = vmatprep.subr.bf16.mxu0 %v2223_v0  ;;  %v2295_v12 = vpack.c.bf16 %v40_v10, %v39_v9  ;;  %v42_v13 = vld [vmem:[#allocation2 + $0x80] sm:$0xff]  ;;  %v2303_v23 = vld [vmem:[#allocation2 + $0x90] ss:$0 sm:$0xff]  ;;  %v56_v46 = vld [vmem:[#allocation2 + $0xf8] sm:$0xff]  ;;  %s2232_s9 = smov 1   ;;  %s2233_s10 = smov 114  }
  0x18   :  { %v2298_v14 = vpack.c.bf16 %v42_v13, %v41_v11  ;;  %v38_v15 = vld [vmem:[#allocation2 + $0x40] ss:$0 sm:$0xff]  ;;  %v51_v44 = vld [vmem:[#allocation2 + $0xd0] sm:$0xff]  ;;  %v2317_v49 = vpack.c.bf16 %v56_v46, %v54_v45  ;;  %v75_v61 = vld [vmem:[#allocation2 + $0x118] sm:$0xff]  ;;  %s2234_s11 = smov 113   ;;  %s2235_s12 = smov 115  }
  0x19   :  { %2013 = vmatpush3.bf16.msra.mxu1 %v2295_v12  ;;  %v49_v42 = vld [vmem:[#allocation2 + $0xc0] sm:$0xff]  ;;  %v55_v51 = vld [vmem:[#allocation2 + $0xf0] sm:$0xff]  ;;  %v77_v62 = vld [vmem:[#allocation2 + $0x128] sm:$0xff]  ;;  %s2236_s13 = smov 116   ;;  %s2237_s14 = smov 117  }
  0x1a   :  { %2007 = vmatpush3.bf16.msra.mxu0 %v37_v6  ;;  %2014 = vmatprep.subr.bf16.mxu1 %v2223_v0  ;;  %v2315_v48 = vpack.c.bf16 %v51_v44, %v49_v42  ;;  %v53_v50 = vld [vmem:[#allocation2 + $0xe0] sm:$0xff]  ;;  %v74_v63 = vld [vmem:[#allocation2 + $0x110] sm:$0xff]  ;;  %v2340_v2 = vpack.c.bf16 %v77_v62, %v75_v61  ;;  %v79_v9 = vld [vmem:[#allocation2 + $0x138] sm:$0xff]  ;;  %s2238_s15 = smov 48   ;;  %s2239_s16 = smov 118  }
  0x1b   :  { %213 = vmatprep.subr.bf16.mxu0 %v2311_v43  ;;  %v2322_v52 = vpack.c.bf16 %v55_v51, %v53_v50  ;;  %v136_v54 = vld [vmem:[%s2773_s2] sm:$0xff]  ;;  %v47_v5 = vld [vmem:[#allocation2 + $0xb0] sm:$0xff]  ;;  %v81_v10 = vld [vmem:[#allocation2 + $0x148] sm:$0xff]  ;;  %s2228_s2 = smov 8   ;;  %s2240_s17 = smov 119  }
  0x1c   :  { %v76_v3 = vld [vmem:[#allocation2 + $0x120] sm:$0xff]  ;;  %v78_v11 = vld [vmem:[#allocation2 + $0x130] sm:$0xff]  ;;  %s2241_s18 = smov 80   ;;  %s2242_s19 = smov 96  }
  0x1d   :  { %2009 = vmatmul.mubr.msk.bf16.vlgmr.msra.gmra.mrb[0].mxu0 %vm91_vm1, %v90_v8  ;;  %2015 = vmatpush3.bf16.msra.mxu1 %v2298_v14  ;;  %v46_v4 = vld [vmem:[#allocation2 + $0xa0] sm:$0xff]  ;;  %v2343_v6 = vpack.c.bf16 %v76_v3, %v74_v63  ;;  %s2243_s20 = smov 112   ;;  %s2244_s21 = smov 120  }
  0x1e   :  { %245 = vmatprep.mubr.bf16.mxu0 %v2227_v47  ;;  %214 = vmatpush1.bf16.msra.mxu0 %v2315_v48  ;;  %v2345_v7 = vpack.c.bf16 %v47_v5, %v46_v4  ;;  %v2394_v5 = vld [vmem:[#allocation2 + $0x150] ss:$0 sm:$0xff]  ;;  %s2245_s24 = smov [#allocation5]  }
  0x1f   :  { %215 = vmatprep.subr.bf16.mxu0 %v2317_v49  ;;  %259 = vmatprep.subr.bf16.mxu1 %v2340_v2  ;;  %s1917_s25 = sshll.u32 %s2245_s24, 4  ;;  %s1918_s25 = int_to_ptr.vmem [resolvable:$true] %s1917_s25 }
  0x20   :  { %p2199_p9 = scmp.lt.s32.totalorder %s1918_s25, %s1918_s25 }
  0x22   :  { %216 = vmatpush1.bf16.msra.mxu0 %v2322_v52 }
  0x23   :  { %2020 = vmatprep.subr.bf16.mxu0 %v2223_v0 }
  0xf0   :  { %v129_v16 = vpop.f32.mrb[0].mxu0 }
  0xf1   :  { %v130_v17 = vadd.f32 %v129_v16, %v38_v15  ;;  %v2010_v18 = vpop.f32.mrb[1].mxu0  ;;  %v2349_v15 = vpack.c.bf16 %v81_v10, %v79_v9  ;;  %v80_v16 = vld [vmem:[#allocation2 + $0x140] sm:$0xff] }
  0xf2   :  { %v132_v19 = vpop.f32.mrb[2].mxu0  ;;  %v65_v18 = vshrl.u32 %v64_v59, 7 }
  0xf3   :  { %2105 = vtanh.f32 %v130_v17  ;;  %v2011_v20 = vpop.f32.mrb[3].mxu0  ;;  %v2353_v17 = vpack.c.bf16 %v80_v16, %v78_v11 }
  0xf4   :  { %v70_v19 = vsub.s32 1, %v65_v18  ;;  %v62_v20 = vld [vmem:[#allocation2 + $0x100] ss:$8 sm:$0x3] }
  0xfd   :  { %v2106_v21 = vpop.eup %2105 }
  0xfe   :  { %v137_v22 = vpack.c.bf16 %v2106_v21, %v2106_v21 }
 0x100   :  { %2017 = vmatmul.mubr.msk.bf16.vlgmr.msra.gmra.mrb[0].mxu1 %vm91_vm1, %v137_v22 }
 0x101   :  { %291 = vmatprep.mubr.bf16.mxu1 %v2227_v47  ;;  %260 = vmatpush1.bf16.msra.mxu1 %v2343_v6 }
 0x102   :  { %261 = vmatprep.subr.bf16.mxu1 %v2349_v15 }
 0x105   :  { %262 = vmatpush1.bf16.msra.mxu1 %v2353_v17 }
 0x106   :  { %383 = vmatprep.subr.bf16.mxu1 %v2340_v2 }
 0x1d3   :  { %v175_v24 = vpop.f32.mrb[0].mxu1 }
 0x1d4   :  { %v176_v25 = vadd.f32 %v175_v24, %v2303_v23  ;;  %v2018_v26 = vpop.f32.mrb[1].mxu1 }
 0x1d5   :  { %v178_v27 = vpop.f32.mrb[2].mxu1 }
 0x1d6   :  { %v1930_v28 = vmul.f32 -1.442695, %v176_v25  ;;  %v2019_v29 = vpop.f32.mrb[3].mxu1 }
 0x1d8   :  { %2107 = vpow2.f32 %v1930_v28 }
 0x1e2   :  { %v2108_v30 = vpop.eup %2107 }
 0x1e3   :  { %v184_v31 = vadd.f32 1.0, %v2108_v30 }
 0x1e5   :  { %2109 = vrcp.f32 %v184_v31 }
 0x1ef   :  { %v2110_v32 = vpop.eup %2109 }
 0x1f0   :  { %v187_v33 = vmul.f32 2.0, %v2110_v32  ;;  %v189_v37 = vmul.f32 %v2110_v32, %v2106_v21  ;;  %v2364_v21 = vrot.slane %v62_v20, %v70_v19 }
 0x1f2   :  { %v1931_v34 = vadd.f32 -1.0, %v187_v33 }
 0x1f4   :  { %191 = vrot.lane.b32.xlu0 %v1931_v34, %s2225_s0  ;;  %v66_v34 = vsub.s32 0, %v65_v18 }
 0x266   :  { %v192_v35 = vpop.permute.xlu0 %191 }
 0x267   :  { %v194_v36 = vmul.f32 %v2110_v32, %v192_v35  ;;  %v2373_v35 = vrot.slane %v62_v20, %v66_v34 }
 0x269   :  { %196 = vrot.lane.b32.xlu0 %v194_v36, %s2226_s30 }
 0x26d   :  { %300 = vperm.xlu0 %2102, %v136_v54  }
 0x2db   :  { %v197_v38 = vpop.permute.xlu0 %196 }
 0x2dc   :  { %v2308_v39 = vadd.f32 %v197_v38, %v189_v37 }
 0x2de   :  { %2111 = vtanh.f32 %v2308_v39 }
 0x2e8   :  { %v2112_v53 = vpop.eup %2111 }
 0x2e9   :  { %202 = vrot.lane.b32.xlu1 %v2112_v53, %s2225_s0 }
 0x2ec   :  { %v301_v1 = vpop.permute.xlu0 %300 }
 0x2ed   :  { %vm302_vm2 = vcmp.eq.s32.totalorder %v2338_v60, %v301_v1 }
 0x2ee   :  { %v1934_v8 = vsel %vm302_vm2, 1.0, %v2223_v0 }
 0x2ef   :  { %v305_v13 = vpack.c.bf16 %v1934_v8, %v1934_v8 }
 0x35b   :  { %v203_v55 = vpop.permute.xlu1 %202 }
 0x35c   :  { %v205_v56 = vmul.f32 %v2110_v32, %v203_v55 }
 0x35e   :  { %v206_v57 = vpack.c.bf16 %v205_v56, %v205_v56 }
 0x360   :  { %208 = vrot.lane.b32.xlu1 %v206_v57, %s2226_s30 }
 0x3d2   :  { %v2332_v58 = vpop.permute.xlu1 %208 }
 0x3d3   :  { %1932 = vmatmul.mubr.msk.bf16.vlgmr.msra.gmra.mrb[4].mxu0 %vm91_vm1, %v2332_v58 }
 0x3d4   :  { %2022 = vmatprep.mubr.msk.bf16.mxu0 %vm2224_vm0, %v2223_v0  ;;  %2021 = vmatpush3.bf16.msra.mxu0 %v2345_v7 }
 0x3d5   :  { %2026 = vmatprep.subr.bf16.mxu0 %v2223_v0 }
 0x3db   :  { %2023 = vmatmul.mubr.msk.bf16.vlgmr.msra.gmra.mrb[8].mxu0 %vm306_vm3, %v305_v13 }
 0x3dc   :  { %2027 = vmatpush3.bf16.msra.mxu0 %v2345_v7  ;;  %2028 = vmatprep.mubr.msk.bf16.mxu0 %vm2224_vm0, %v2223_v0 }
 0x3dd   :  { %2032 = vmatprep.subr.bf16.mxu0 %v2223_v0 }
 0x4a6   :  { %v247_v22 = vpop.f32.mrb[4].mxu0 }
 0x4a7   :  { %v249_v24 = vpop.f32.mrb[5].mxu0  ;;  %v2376_v37 = vadd.f32 %v247_v22, %v2373_v35 }
 0x4a8   :  { %v250_v25 = vadd.f32 %v249_v24, %v2364_v21  ;;  %v251_v26 = vpop.f32.mrb[6].mxu0 }
 0x4a9   :  { %v252_v27 = vpop.f32.mrb[7].mxu0 }
 0x4aa   :  { %2113 = vtanh.f32 %v250_v25 }
 0x4ae   :  { %v344_v30 = vpop.f32.mrb[8].mxu0 }
 0x4af   :  { %v2024_v31 = vpop.f32.mrb[9].mxu0 }
 0x4b0   :  { %v347_v32 = vpop.f32.mrb[10].mxu0 }
 0x4b1   :  { %v2025_v33 = vpop.f32.mrb[11].mxu0 }
 0x4b4   :  { %v2114_v28 = vpop.eup %2113 }
 0x4b5   :  { %v255_v29 = vpack.c.bf16 %v2114_v28, %v2114_v28 }
 0x4b7   :  { %1933 = vmatmul.mubr.msk.bf16.vlgmr.msra.gmra.mrb[4].mxu1 %vm91_vm1, %v255_v29 }
 0x4b8   :  { %384 = vmatpush1.bf16.msra.mxu1 %v2343_v6  ;;  %415 = vmatprep.mubr.bf16.mxu1 %v2227_v47 }
 0x4b9   :  { %385 = vmatprep.subr.bf16.mxu1 %v2349_v15 }
 0x4bc   :  { %386 = vmatpush1.bf16.msra.mxu1 %v2353_v17 }
 0x4bd   :  { %559 = vmatprep.subr.bf16.mxu1 %v2340_v2 }
 0x58a   :  { %v293_v36 = vpop.f32.mrb[4].mxu1 }
 0x58b   :  { %v345_v38 = vadd.f32 %v344_v30, %v293_v36  ;;  %v295_v40 = vpop.f32.mrb[5].mxu1 }
 0x58c   :  { %v296_v41 = vpop.f32.mrb[6].mxu1 }
 0x58d   :  { %v350_v42 = vadd.f32 %v345_v38, %v2376_v37  ;;  %v297_v44 = vpop.f32.mrb[7].mxu1 }
 0x58f   :  { %v1936_v45 = vmul.f32 -1.442695, %v350_v42 }
 0x591   :  { %2115 = vpow2.f32 %v1936_v45 }
 0x59b   :  { %v2116_v46 = vpop.eup %2115 }
 0x59c   :  { %v354_v50 = vadd.f32 1.0, %v2116_v46 }
 0x59e   :  { %2117 = vrcp.f32 %v354_v50 }
 0x5a8   :  { %v2118_v51 = vpop.eup %2117 }
 0x5a9   :  { %v357_v53 = vmul.f32 2.0, %v2118_v51  ;;  %v359_v57 = vmul.f32 %v2118_v51, %v2114_v28  ;;  %v2231_v28 = vmov 15  }
 0x5aa   :  { %2103 = vset.pattern.permute.xlu0 %v2231_v28  ;;  %2104 = vset.pattern.permute.xlu1 %v2231_v28 }
 0x5ab   :  { %v1937_v54 = vadd.f32 -1.0, %v357_v53 }
 0x5ad   :  { %361 = vrot.lane.b32.xlu1 %v1937_v54, %s2225_s0 }
 0x61f   :  { %v362_v55 = vpop.permute.xlu1 %361 }
 0x620   :  { %v364_v56 = vmul.f32 %v2118_v51, %v362_v55 }
 0x622   :  { %366 = vrot.lane.b32.xlu1 %v364_v56, %s2226_s30 }
 0x694   :  { %v367_v59 = vpop.permute.xlu1 %366 }
 0x695   :  { %v2381_v61 = vadd.f32 %v367_v59, %v359_v57 }
 0x697   :  { %2119 = vtanh.f32 %v2381_v61 }
 0x6a1   :  { %v2120_v62 = vpop.eup %2119 }
 0x6a2   :  { %372 = vrot.lane.b32.xlu0 %v2120_v62, %s2225_s0 }
 0x714   :  { %v373_v63 = vpop.permute.xlu0 %372 }
 0x715   :  { %v375_v1 = vmul.f32 %v2118_v51, %v373_v63 }
 0x717   :  { %v376_v3 = vpack.c.bf16 %v375_v1, %v375_v1 }
 0x719   :  { %378 = vrot.lane.b32.xlu1 %v376_v3, %s2226_s30 }
 0x71d   :  { %431 = vrot.lane.b32.xlu1 %v2338_v60, %s2228_s2 }
 0x78b   :  { %v379_v4 = vpop.permute.xlu1 %378 }
 0x78c   :  { %1938 = vmatmul.mubr.msk.bf16.vlgmr.msra.gmra.mrb[8].mxu1 %vm91_vm1, %v379_v4 }
 0x78d   :  { %560 = vmatpush1.bf16.msra.mxu1 %v2343_v6  ;;  %591 = vmatprep.mubr.bf16.mxu1 %v2227_v47 }
 0x78e   :  { %561 = vmatprep.subr.bf16.mxu1 %v2349_v15 }
 0x78f   :  { %v2403_v16 = vpop.permute.xlu1 %431 }
 0x790   :  { %vm2407_vm4 = vcmp.lt.s32.totalorder %v2338_v60, %v2403_v16 }
 0x791   :  { %562 = vmatpush1.bf16.msra.mxu1 %v2353_v17 }
 0x792   :  { %732 = vmatprep.subr.bf16.mxu1 %v2340_v2 }
 0x85f   :  { %v2396_v8 = vpop.f32.mrb[8].mxu1 }
 0x860   :  { %v419_v9 = vpop.f32.mrb[9].mxu1 }
 0x861   :  { %v2399_v10 = vadd.f32 %v419_v9, %v2394_v5  ;;  %v421_v11 = vpop.f32.mrb[10].mxu1 }
 0x862   :  { %v422_v13 = vpop.f32.mrb[11].mxu1 }
 0x863   :  { %426 = vrot.lane.b32.xlu0 %v2399_v10, %s2228_s2 }
 0x8d5   :  { %v427_v19 = vpop.permute.xlu0 %426 }
 0x8d6   :  { %vm430_vm5 = vcmp.eq.f32.partialorder %v2399_v10, %v427_v19  ;;  %vm429_vm6 = vcmp.gt.f32.partialorder %v2399_v10, %v427_v19 }
 0x8d7   :  { %vm434_vm7 = vmand %vm430_vm5, %vm2407_vm4 }
 0x8d8   :  { %vm435_vm8 = vmor %vm429_vm6, %vm434_vm7 }
 0x8d9   :  { %v437_v20 = vsel %vm435_vm8, %v2338_v60, %v2403_v16  ;;  %v436_v22 = vsel %vm435_vm8, %v2399_v10, %v427_v19 }
 0x8da   :  { %444 = vrot.lane.b32.xlu1 %v437_v20, %s2229_s7  ;;  %439 = vrot.lane.b32.xlu0 %v436_v22, %s2229_s7 }
 0x94c   :  { %v445_v24 = vpop.permute.xlu1 %444  ;;  %v440_v25 = vpop.permute.xlu0 %439 }
 0x94d   :  { %vm446_vm9 = vcmp.lt.s32.totalorder %v437_v20, %v445_v24  ;;  %vm443_vm10 = vcmp.eq.f32.partialorder %v436_v22, %v440_v25  ;;  %vm442_vm11 = vcmp.gt.f32.partialorder %v436_v22, %v440_v25 }
 0x94e   :  { %vm447_vm12 = vmand %vm443_vm10, %vm446_vm9 }
 0x94f   :  { %vm448_vm13 = vmor %vm442_vm11, %vm447_vm12 }
 0x950   :  { %v450_v26 = vsel %vm448_vm13, %v437_v20, %v445_v24  ;;  %v449_v27 = vsel %vm448_vm13, %v436_v22, %v440_v25 }
 0x951   :  { %457 = vrot.lane.b32.xlu1 %v450_v26, %s2230_s8  ;;  %452 = vrot.lane.b32.xlu0 %v449_v27, %s2230_s8 }
 0x9c3   :  { %v458_v29 = vpop.permute.xlu1 %457  ;;  %v453_v30 = vpop.permute.xlu0 %452 }
 0x9c4   :  { %vm459_vm14 = vcmp.lt.s32.totalorder %v450_v26, %v458_v29  ;;  %vm456_vm15 = vcmp.eq.f32.partialorder %v449_v27, %v453_v30  ;;  %vm455_vm2 = vcmp.gt.f32.partialorder %v449_v27, %v453_v30 }
 0x9c5   :  { %vm460_vm5 = vmand %vm456_vm15, %vm459_vm14 }
 0x9c6   :  { %vm461_vm6 = vmor %vm455_vm2, %vm460_vm5 }
 0x9c7   :  { %v463_v31 = vsel %vm461_vm6, %v450_v26, %v458_v29  ;;  %v462_v32 = vsel %vm461_vm6, %v449_v27, %v453_v30 }
 0x9c8   :  { %470 = vrot.lane.b32.xlu1 %v463_v31, %s2232_s9  ;;  %465 = vrot.lane.b32.xlu0 %v462_v32, %s2232_s9 }
 0xa3a   :  { %v471_v33 = vpop.permute.xlu1 %470  ;;  %v466_v34 = vpop.permute.xlu0 %465 }
 0xa3b   :  { %vm472_vm7 = vcmp.lt.s32.totalorder %v463_v31, %v471_v33  ;;  %vm468_vm8 = vcmp.gt.f32.partialorder %v462_v32, %v466_v34  ;;  %vm469_vm9 = vcmp.eq.f32.partialorder %v462_v32, %v466_v34 }
 0xa3c   :  { %vm473_vm10 = vmand %vm469_vm9, %vm472_vm7 }
 0xa3d   :  { %vm474_vm11 = vmor %vm468_vm8, %vm473_vm10 }
 0xa3e   :  { %v2424_v36 = vsel %vm474_vm11, %v463_v31, %v471_v33 }
 0xa3f   :  { %477 = vperm.xlu0 %2103, %v2424_v36  }
 0xabe   :  { %v478_v38 = vpop.permute.xlu0 %477 }
 0xabf   :  { %vm479_vm12 = vcmp.eq.s32.totalorder %v2338_v60, %v478_v38 }
 0xac0   :  { %v1939_v40 = vsel %vm479_vm12, 1.0, %v2223_v0 }
 0xac1   :  { %v482_v41 = vpack.c.bf16 %v1939_v40, %v1939_v40 }
 0xac3   :  { %2029 = vmatmul.mubr.msk.bf16.vlgmr.msra.gmra.mrb[12].mxu0 %vm306_vm3, %v482_v41 }
 0xac4   :  { %2033 = vmatpush3.bf16.msra.mxu0 %v2345_v7  ;;  %2034 = vmatprep.mubr.msk.bf16.mxu0 %vm2224_vm0, %v2223_v0 }
 0xac5   :  { %2038 = vmatprep.subr.bf16.mxu0 %v2223_v0 }
 0xb96   :  { %v520_v42 = vpop.f32.mrb[12].mxu0 }
 0xb97   :  { %v521_v44 = vadd.f32 %v520_v42, %v2396_v8  ;;  %v2030_v45 = vpop.f32.mrb[13].mxu0 }
 0xb98   :  { %v523_v46 = vpop.f32.mrb[14].mxu0 }
 0xb99   :  { %v526_v50 = vadd.f32 %v521_v44, %v2376_v37  ;;  %v2031_v51 = vpop.f32.mrb[15].mxu0 }
 0xb9b   :  { %v1941_v53 = vmul.f32 -1.442695, %v526_v50 }
 0xb9d   :  { %2121 = vpow2.f32 %v1941_v53 }
 0xba7   :  { %v2122_v54 = vpop.eup %2121 }
 0xba8   :  { %v530_v55 = vadd.f32 1.0, %v2122_v54 }
 0xbaa   :  { %2123 = vrcp.f32 %v530_v55 }
 0xbb4   :  { %v2124_v56 = vpop.eup %2123 }
 0xbb5   :  { %v533_v57 = vmul.f32 2.0, %v2124_v56  ;;  %v535_v1 = vmul.f32 %v2124_v56, %v2381_v61 }
 0xbb7   :  { %v1942_v59 = vadd.f32 -1.0, %v533_v57 }
 0xbb9   :  { %537 = vrot.lane.b32.xlu1 %v1942_v59, %s2225_s0 }
 0xc2b   :  { %v538_v62 = vpop.permute.xlu1 %537 }
 0xc2c   :  { %v540_v63 = vmul.f32 %v2124_v56, %v538_v62 }
 0xc2e   :  { %542 = vrot.lane.b32.xlu1 %v540_v63, %s2226_s30 }
 0xca0   :  { %v543_v3 = vpop.permute.xlu1 %542 }
 0xca1   :  { %v2439_v4 = vadd.f32 %v543_v3, %v535_v1 }
 0xca3   :  { %2125 = vtanh.f32 %v2439_v4 }
 0xcad   :  { %v2126_v8 = vpop.eup %2125 }
 0xcae   :  { %548 = vrot.lane.b32.xlu0 %v2126_v8, %s2225_s0 }
 0xd20   :  { %v549_v9 = vpop.permute.xlu0 %548 }
 0xd21   :  { %v551_v11 = vmul.f32 %v2124_v56, %v549_v9 }
 0xd23   :  { %v552_v13 = vpack.c.bf16 %v551_v11, %v551_v11 }
 0xd25   :  { %554 = vrot.lane.b32.xlu1 %v552_v13, %s2226_s30 }
 0xd97   :  { %v555_v19 = vpop.permute.xlu1 %554 }
 0xd98   :  { %1943 = vmatmul.mubr.msk.bf16.vlgmr.msra.gmra.mrb[12].mxu1 %vm91_vm1, %v555_v19 }
 0xd99   :  { %733 = vmatpush1.bf16.msra.mxu1 %v2343_v6  ;;  %764 = vmatprep.mubr.bf16.mxu1 %v2227_v47 }
 0xd9a   :  { %734 = vmatprep.subr.bf16.mxu1 %v2349_v15 }
 0xd9d   :  { %735 = vmatpush1.bf16.msra.mxu1 %v2353_v17 }
 0xd9e   :  { %905 = vmatprep.subr.bf16.mxu1 %v2340_v2 }
 0xe6b   :  { %v593_v61 = vpop.f32.mrb[12].mxu1 }
 0xe6c   :  { %v595_v20 = vpop.f32.mrb[13].mxu1 }
 0xe6d   :  { %v2451_v22 = vadd.f32 %v595_v20, %v2394_v5  ;;  %v597_v24 = vpop.f32.mrb[14].mxu1 }
 0xe6e   :  { %v598_v25 = vpop.f32.mrb[15].mxu1 }
 0xe6f   :  { %602 = vrot.lane.b32.xlu0 %v2451_v22, %s2228_s2 }
 0xee1   :  { %v603_v26 = vpop.permute.xlu0 %602 }
 0xee2   :  { %vm605_vm13 = vcmp.gt.f32.partialorder %v2451_v22, %v603_v26  ;;  %vm606_vm14 = vcmp.eq.f32.partialorder %v2451_v22, %v603_v26 }
 0xee3   :  { %vm607_vm15 = vmand %vm606_vm14, %vm2407_vm4 }
 0xee4   :  { %vm608_vm2 = vmor %vm605_vm13, %vm607_vm15 }
 0xee5   :  { %v610_v27 = vsel %vm608_vm2, %v2338_v60, %v2403_v16  ;;  %v609_v28 = vsel %vm608_vm2, %v2451_v22, %v603_v26 }
 0xee6   :  { %617 = vrot.lane.b32.xlu0 %v610_v27, %s2229_s7  ;;  %612 = vrot.lane.b32.xlu1 %v609_v28, %s2229_s7 }
 0xf58   :  { %v618_v29 = vpop.permute.xlu0 %617  ;;  %v613_v30 = vpop.permute.xlu1 %612 }
 0xf59   :  { %vm619_vm5 = vcmp.lt.s32.totalorder %v610_v27, %v618_v29  ;;  %vm615_vm6 = vcmp.gt.f32.partialorder %v609_v28, %v613_v30  ;;  %vm616_vm7 = vcmp.eq.f32.partialorder %v609_v28, %v613_v30 }
 0xf5a   :  { %vm620_vm8 = vmand %vm616_vm7, %vm619_vm5 }
 0xf5b   :  { %vm621_vm9 = vmor %vm615_vm6, %vm620_vm8 }
 0xf5c   :  { %v623_v31 = vsel %vm621_vm9, %v610_v27, %v618_v29  ;;  %v622_v32 = vsel %vm621_vm9, %v609_v28, %v613_v30 }
 0xf5d   :  { %630 = vrot.lane.b32.xlu0 %v623_v31, %s2230_s8  ;;  %625 = vrot.lane.b32.xlu1 %v622_v32, %s2230_s8 }
 0xfcf   :  { %v631_v33 = vpop.permute.xlu0 %630  ;;  %v626_v34 = vpop.permute.xlu1 %625 }
 0xfd0   :  { %vm632_vm10 = vcmp.lt.s32.totalorder %v623_v31, %v631_v33  ;;  %vm628_vm11 = vcmp.gt.f32.partialorder %v622_v32, %v626_v34  ;;  %vm629_vm12 = vcmp.eq.f32.partialorder %v622_v32, %v626_v34 }
 0xfd1   :  { %vm633_vm13 = vmand %vm629_vm12, %vm632_vm10 }
 0xfd2   :  { %vm634_vm14 = vmor %vm628_vm11, %vm633_vm13 }
 0xfd3   :  { %v636_v38 = vsel %vm634_vm14, %v623_v31, %v631_v33  ;;  %v635_v40 = vsel %vm634_vm14, %v622_v32, %v626_v34 }
 0xfd4   :  { %643 = vrot.lane.b32.xlu0 %v636_v38, %s2232_s9  ;;  %638 = vrot.lane.b32.xlu1 %v635_v40, %s2232_s9 }
0x1046   :  { %v644_v41 = vpop.permute.xlu0 %643  ;;  %v639_v42 = vpop.permute.xlu1 %638 }
0x1047   :  { %vm645_vm15 = vcmp.lt.s32.totalorder %v636_v38, %v644_v41  ;;  %vm641_vm2 = vcmp.gt.f32.partialorder %v635_v40, %v639_v42  ;;  %vm642_vm5 = vcmp.eq.f32.partialorder %v635_v40, %v639_v42 }
0x1048   :  { %vm646_vm6 = vmand %vm642_vm5, %vm645_vm15 }
0x1049   :  { %vm647_vm7 = vmor %vm641_vm2, %vm646_vm6 }
0x104a   :  { %v2468_v44 = vsel %vm647_vm7, %v636_v38, %v644_v41 }
0x104b   :  { %650 = vperm.xlu1 %2104, %v2468_v44  }
0x10ca   :  { %v651_v45 = vpop.permute.xlu1 %650 }
0x10cb   :  { %vm652_vm8 = vcmp.eq.s32.totalorder %v2338_v60, %v651_v45 }
0x10cc   :  { %v1944_v46 = vsel %vm652_vm8, 1.0, %v2223_v0 }
0x10cd   :  { %v655_v50 = vpack.c.bf16 %v1944_v46, %v1944_v46 }
0x10cf   :  { %2035 = vmatmul.mubr.msk.bf16.vlgmr.msra.gmra.mrb[16].mxu0 %vm306_vm3, %v655_v50 }
0x10d0   :  { %2039 = vmatpush3.bf16.msra.mxu0 %v2345_v7  ;;  %2040 = vmatprep.mubr.msk.bf16.mxu0 %vm2224_vm0, %v2223_v0 }
0x10d1   :  { %2044 = vmatprep.subr.bf16.mxu0 %v2223_v0 }
0x11a2   :  { %v693_v51 = vpop.f32.mrb[16].mxu0 }
0x11a3   :  { %v694_v53 = vadd.f32 %v693_v51, %v593_v61  ;;  %v2036_v54 = vpop.f32.mrb[17].mxu0 }
0x11a4   :  { %v696_v55 = vpop.f32.mrb[18].mxu0 }
0x11a5   :  { %v699_v56 = vadd.f32 %v694_v53, %v2376_v37  ;;  %v2037_v57 = vpop.f32.mrb[19].mxu0 }
0x11a7   :  { %v1946_v59 = vmul.f32 -1.442695, %v699_v56 }
0x11a9   :  { %2127 = vpow2.f32 %v1946_v59 }
0x11b3   :  { %v2128_v62 = vpop.eup %2127 }
0x11b4   :  { %v703_v63 = vadd.f32 1.0, %v2128_v62 }
0x11b6   :  { %2129 = vrcp.f32 %v703_v63 }
0x11c0   :  { %v2130_v1 = vpop.eup %2129 }
0x11c1   :  { %v706_v3 = vmul.f32 2.0, %v2130_v1  ;;  %v708_v13 = vmul.f32 %v2130_v1, %v2439_v4 }
0x11c3   :  { %v1947_v8 = vadd.f32 -1.0, %v706_v3 }
0x11c5   :  { %710 = vrot.lane.b32.xlu0 %v1947_v8, %s2225_s0 }
0x1237   :  { %v711_v9 = vpop.permute.xlu0 %710 }
0x1238   :  { %v713_v11 = vmul.f32 %v2130_v1, %v711_v9 }
0x123a   :  { %715 = vrot.lane.b32.xlu1 %v713_v11, %s2226_s30 }
0x12ac   :  { %v716_v19 = vpop.permute.xlu1 %715 }
0x12ad   :  { %v2482_v61 = vadd.f32 %v716_v19, %v708_v13 }
0x12af   :  { %2131 = vtanh.f32 %v2482_v61 }
0x12b9   :  { %v2132_v20 = vpop.eup %2131 }
0x12ba   :  { %721 = vrot.lane.b32.xlu0 %v2132_v20, %s2225_s0 }
0x132c   :  { %v722_v24 = vpop.permute.xlu0 %721 }
0x132d   :  { %v724_v25 = vmul.f32 %v2130_v1, %v722_v24 }
0x132f   :  { %v725_v26 = vpack.c.bf16 %v724_v25, %v724_v25 }
0x1331   :  { %727 = vrot.lane.b32.xlu1 %v725_v26, %s2226_s30 }
0x13a3   :  { %v728_v27 = vpop.permute.xlu1 %727 }
0x13a4   :  { %1948 = vmatmul.mubr.msk.bf16.vlgmr.msra.gmra.mrb[16].mxu1 %vm91_vm1, %v728_v27 }
0x13a5   :  { %906 = vmatpush1.bf16.msra.mxu1 %v2343_v6  ;;  %937 = vmatprep.mubr.bf16.mxu1 %v2227_v47 }
0x13a6   :  { %907 = vmatprep.subr.bf16.mxu1 %v2349_v15 }
0x13a9   :  { %908 = vmatpush1.bf16.msra.mxu1 %v2353_v17 }
0x13aa   :  { %1066 = vmatprep.subr.bf16.mxu1 %v2311_v43 }
0x1477   :  { %v2493_v4 = vpop.f32.mrb[16].mxu1 }
0x1478   :  { %v768_v28 = vpop.f32.mrb[17].mxu1 }
0x1479   :  { %v2496_v29 = vadd.f32 %v768_v28, %v2394_v5  ;;  %v770_v30 = vpop.f32.mrb[18].mxu1 }
0x147a   :  { %v771_v31 = vpop.f32.mrb[19].mxu1 }
0x147b   :  { %775 = vrot.lane.b32.xlu0 %v2496_v29, %s2228_s2 }
0x14ed   :  { %v776_v32 = vpop.permute.xlu0 %775 }
0x14ee   :  { %vm778_vm9 = vcmp.gt.f32.partialorder %v2496_v29, %v776_v32  ;;  %vm779_vm10 = vcmp.eq.f32.partialorder %v2496_v29, %v776_v32 }
0x14ef   :  { %vm780_vm11 = vmand %vm779_vm10, %vm2407_vm4 }
0x14f0   :  { %vm781_vm12 = vmor %vm778_vm9, %vm780_vm11 }
0x14f1   :  { %v783_v43 = vsel %vm781_vm12, %v2338_v60, %v2403_v16  ;;  %v782_v33 = vsel %vm781_vm12, %v2496_v29, %v776_v32 }
0x14f2   :  { %790 = vrot.lane.b32.xlu0 %v783_v43, %s2229_s7  ;;  %785 = vrot.lane.b32.xlu1 %v782_v33, %s2229_s7 }
0x1564   :  { %v791_v34 = vpop.permute.xlu0 %790  ;;  %v786_v38 = vpop.permute.xlu1 %785 }
0x1565   :  { %vm792_vm13 = vcmp.lt.s32.totalorder %v783_v43, %v791_v34  ;;  %vm788_vm14 = vcmp.gt.f32.partialorder %v782_v33, %v786_v38  ;;  %vm789_vm15 = vcmp.eq.f32.partialorder %v782_v33, %v786_v38 }
0x1566   :  { %vm793_vm2 = vmand %vm789_vm15, %vm792_vm13 }
0x1567   :  { %vm794_vm5 = vmor %vm788_vm14, %vm793_vm2 }
0x1568   :  { %v796_v40 = vsel %vm794_vm5, %v783_v43, %v791_v34  ;;  %v795_v41 = vsel %vm794_vm5, %v782_v33, %v786_v38 }
0x1569   :  { %803 = vrot.lane.b32.xlu0 %v796_v40, %s2230_s8  ;;  %798 = vrot.lane.b32.xlu1 %v795_v41, %s2230_s8 }
0x15db   :  { %v804_v42 = vpop.permute.xlu0 %803  ;;  %v799_v45 = vpop.permute.xlu1 %798 }
0x15dc   :  { %vm805_vm6 = vcmp.lt.s32.totalorder %v796_v40, %v804_v42  ;;  %vm801_vm7 = vcmp.gt.f32.partialorder %v795_v41, %v799_v45  ;;  %vm802_vm8 = vcmp.eq.f32.partialorder %v795_v41, %v799_v45 }
0x15dd   :  { %vm806_vm9 = vmand %vm802_vm8, %vm805_vm6 }
0x15de   :  { %vm807_vm10 = vmor %vm801_vm7, %vm806_vm9 }
0x15df   :  { %v809_v46 = vsel %vm807_vm10, %v796_v40, %v804_v42  ;;  %v808_v50 = vsel %vm807_vm10, %v795_v41, %v799_v45 }
0x15e0   :  { %816 = vrot.lane.b32.xlu0 %v809_v46, %s2232_s9  ;;  %811 = vrot.lane.b32.xlu1 %v808_v50, %s2232_s9 }
0x1652   :  { %v817_v51 = vpop.permute.xlu0 %816  ;;  %v812_v53 = vpop.permute.xlu1 %811 }
0x1653   :  { %vm818_vm11 = vcmp.lt.s32.totalorder %v809_v46, %v817_v51  ;;  %vm814_vm12 = vcmp.gt.f32.partialorder %v808_v50, %v812_v53  ;;  %vm815_vm13 = vcmp.eq.f32.partialorder %v808_v50, %v812_v53 }
0x1654   :  { %vm819_vm14 = vmand %vm815_vm13, %vm818_vm11 }
0x1655   :  { %vm820_vm15 = vmor %vm814_vm12, %vm819_vm14 }
0x1656   :  { %v2513_v54 = vsel %vm820_vm15, %v809_v46, %v817_v51 }
0x1657   :  { %823 = vperm.xlu1 %2104, %v2513_v54  }
0x16d6   :  { %v824_v55 = vpop.permute.xlu1 %823 }
0x16d7   :  { %vm825_vm2 = vcmp.eq.s32.totalorder %v2338_v60, %v824_v55 }
0x16d8   :  { %v1949_v56 = vsel %vm825_vm2, 1.0, %v2223_v0 }
0x16d9   :  { %v828_v57 = vpack.c.bf16 %v1949_v56, %v1949_v56 }
0x16db   :  { %2041 = vmatmul.mubr.msk.bf16.vlgmr.msra.gmra.mrb[20].mxu0 %vm306_vm3, %v828_v57 }
0x16dc   :  { %2045 = vmatpush3.bf16.msra.mxu0 %v2295_v12  ;;  %2048 = vmatprep.mubr.msk.bf16.mxu0 %vm2224_vm0, %v2223_v0 }
0x16dd   :  { %2046 = vmatprep.subr.bf16.mxu0 %v2223_v0 }
0x16e0   :  { %2047 = vmatpush3.bf16.msra.mxu0 %v2298_v14 }
0x16e1   :  { %1112 = vmatprep.subr.bf16.mxu0 %v2340_v2 }
0x16e3   :  { %2049 = vmatmul.mubr.msk.bf16.vlgmr.msra.gmra.mrb[24].mxu0 %vm91_vm1, %v2332_v58 }
0x16e4   :  { %1113 = vmatpush1.bf16.msra.mxu0 %v2343_v6  ;;  %1144 = vmatprep.mubr.bf16.mxu0 %v2227_v47 }
0x16e5   :  { %1114 = vmatprep.subr.bf16.mxu0 %v2349_v15 }
0x16e8   :  { %1115 = vmatpush1.bf16.msra.mxu0 %v2353_v17 }
0x16e9   :  { %1235 = vmatprep.subr.bf16.mxu0 %v2340_v2 }
0x17ae   :  { %v866_v12 = vpop.f32.mrb[20].mxu0 }
0x17af   :  { %v867_v59 = vadd.f32 %v866_v12, %v2493_v4  ;;  %v2042_v62 = vpop.f32.mrb[21].mxu0 }
0x17b0   :  { %v869_v14 = vpop.f32.mrb[22].mxu0 }
0x17b1   :  { %v872_v63 = vadd.f32 %v867_v59, %v2376_v37  ;;  %v2043_v1 = vpop.f32.mrb[23].mxu0 }
0x17b3   :  { %v1951_v3 = vmul.f32 -1.442695, %v872_v63 }
0x17b5   :  { %2133 = vpow2.f32 %v1951_v3 }
0x17b6   :  { %v1028_v58 = vpop.f32.mrb[24].mxu0 }
0x17b7   :  { %v2050_v8 = vpop.f32.mrb[25].mxu0  ;;  %v1029_v37 = vadd.f32 %v1028_v58, %v2303_v23 }
0x17b8   :  { %v1031_v9 = vpop.f32.mrb[26].mxu0 }
0x17b9   :  { %v2051_v11 = vpop.f32.mrb[27].mxu0  ;;  %v1955_v4 = vmul.f32 -1.442695, %v1029_v37 }
0x17bf   :  { %v2134_v13 = vpop.eup %2133 }
0x17c0   :  { %v876_v19 = vadd.f32 1.0, %v2134_v13 }
0x17c2   :  { %2135 = vrcp.f32 %v876_v19 }
0x17c3   :  { %2137 = vpow2.f32 %v1955_v4 }
0x17cc   :  { %v2136_v20 = vpop.eup %2135 }
0x17cd   :  { %v879_v24 = vmul.f32 2.0, %v2136_v20  ;;  %v2138_v28 = vpop.eup %2137  ;;  %v881_v31 = vmul.f32 %v2136_v20, %v2482_v61 }
0x17ce   :  { %v1037_v30 = vadd.f32 1.0, %v2138_v28 }
0x17cf   :  { %v1952_v25 = vadd.f32 -1.0, %v879_v24 }
0x17d0   :  { %2139 = vrcp.f32 %v1037_v30 }
0x17d1   :  { %883 = vrot.lane.b32.xlu0 %v1952_v25, %s2225_s0 }
0x17da   :  { %v2140_v33 = vpop.eup %2139 }
0x17db   :  { %v1040_v34 = vmul.f32 2.0, %v2140_v33  ;;  %v1042_v50 = vmul.f32 %v2140_v33, %v2308_v39 }
0x17dd   :  { %v1956_v40 = vadd.f32 -1.0, %v1040_v34 }
0x1843   :  { %v884_v26 = vpop.permute.xlu0 %883 }
0x1844   :  { %v886_v27 = vmul.f32 %v2136_v20, %v884_v26 }
0x1846   :  { %888 = vrot.lane.b32.xlu1 %v886_v27, %s2226_s30 }
0x18b8   :  { %v889_v32 = vpop.permute.xlu1 %888 }
0x18b9   :  { %v891_v43 = vadd.f32 %v889_v32, %v881_v31 }
0x18bb   :  { %2141 = vtanh.f32 %v891_v43 }
0x18c5   :  { %v2142_v38 = vpop.eup %2141 }
0x18c6   :  { %894 = vrot.lane.b32.xlu0 %v2142_v38, %s2225_s0 }
0x18ca   :  { %1044 = vrot.lane.b32.xlu0 %v1956_v40, %s2225_s0 }
0x1938   :  { %v895_v41 = vpop.permute.xlu0 %894 }
0x1939   :  { %v897_v23 = vmul.f32 %v2136_v20, %v895_v41 }
0x193b   :  { %v898_v42 = vpack.c.bf16 %v897_v23, %v897_v23 }
0x193c   :  { %v1045_v45 = vpop.permute.xlu0 %1044 }
0x193d   :  { %900 = vrot.lane.b32.xlu1 %v898_v42, %s2226_s30  ;;  %v1047_v46 = vmul.f32 %v2140_v33, %v1045_v45 }
0x1941   :  { %1049 = vrot.lane.b32.xlu1 %v1047_v46, %s2226_s30 }
0x19af   :  { %v901_v61 = vpop.permute.xlu1 %900 }
0x19b0   :  { %1953 = vmatmul.mubr.msk.bf16.vlgmr.msra.gmra.mrb[20].mxu1 %vm91_vm1, %v901_v61 }
0x19b1   :  { %1067 = vmatpush1.bf16.msra.mxu1 %v2315_v48  ;;  %1098 = vmatprep.mubr.bf16.mxu1 %v2227_v47 }
0x19b2   :  { %1068 = vmatprep.subr.bf16.mxu1 %v2317_v49 }
0x19b3   :  { %v1050_v51 = vpop.permute.xlu1 %1049 }
0x19b4   :  { %v1052_v53 = vadd.f32 %v1050_v51, %v1042_v50 }
0x19b5   :  { %1069 = vmatpush1.bf16.msra.mxu1 %v2322_v52 }
0x19b6   :  { %2143 = vtanh.f32 %v1052_v53  ;;  %2052 = vmatprep.subr.bf16.mxu1 %v2223_v0 }
0x19c0   :  { %v2144_v55 = vpop.eup %2143 }
0x19c1   :  { %1055 = vrot.lane.b32.xlu0 %v2144_v55, %s2225_s0 }
0x1a33   :  { %v1056_v56 = vpop.permute.xlu0 %1055 }
0x1a34   :  { %v1058_v57 = vmul.f32 %v2140_v33, %v1056_v56 }
0x1a36   :  { %v1059_v12 = vpack.c.bf16 %v1058_v57, %v1058_v57 }
0x1a38   :  { %1061 = vrot.lane.b32.xlu0 %v1059_v12, %s2226_s30 }
0x1a83   :  { %v939_v48 = vpop.f32.mrb[20].mxu1 }
0x1a84   :  { %v940_v59 = vpop.f32.mrb[21].mxu1 }
0x1a85   :  { %v2552_v39 = vadd.f32 %v940_v59, %v2394_v5  ;;  %v942_v49 = vpop.f32.mrb[22].mxu1 }
0x1a86   :  { %v943_v62 = vpop.f32.mrb[23].mxu1 }
0x1a87   :  { %947 = vrot.lane.b32.xlu1 %v2552_v39, %s2228_s2 }
0x1aaa   :  { %v1062_v52 = vpop.permute.xlu0 %1061 }
0x1aab   :  { %1957 = vmatmul.mubr.msk.bf16.vlgmr.msra.gmra.mrb[24].mxu1 %vm91_vm1, %v1062_v52 }
0x1aac   :  { %2053 = vmatpush3.bf16.msra.mxu1 %v2345_v7  ;;  %2054 = vmatprep.mubr.msk.bf16.mxu1 %vm2224_vm0, %v2223_v0 }
0x1aad   :  { %2058 = vmatprep.subr.bf16.mxu1 %v2223_v0 }
0x1af9   :  { %v948_v14 = vpop.permute.xlu1 %947 }
0x1afa   :  { %vm950_vm5 = vcmp.gt.f32.partialorder %v2552_v39, %v948_v14  ;;  %vm951_vm6 = vcmp.eq.f32.partialorder %v2552_v39, %v948_v14 }
0x1afb   :  { %vm952_vm7 = vmand %vm951_vm6, %vm2407_vm4 }
0x1afc   :  { %vm953_vm8 = vmor %vm950_vm5, %vm952_vm7 }
0x1afd   :  { %v955_v63 = vsel %vm953_vm8, %v2338_v60, %v2403_v16  ;;  %v954_v1 = vsel %vm953_vm8, %v2552_v39, %v948_v14 }
0x1afe   :  { %962 = vrot.lane.b32.xlu0 %v955_v63, %s2229_s7  ;;  %957 = vrot.lane.b32.xlu1 %v954_v1, %s2229_s7 }
0x1b70   :  { %v963_v3 = vpop.permute.xlu0 %962  ;;  %v958_v58 = vpop.permute.xlu1 %957 }
0x1b71   :  { %vm964_vm9 = vcmp.lt.s32.totalorder %v955_v63, %v963_v3  ;;  %vm960_vm10 = vcmp.gt.f32.partialorder %v954_v1, %v958_v58  ;;  %vm961_vm11 = vcmp.eq.f32.partialorder %v954_v1, %v958_v58 }
0x1b72   :  { %vm965_vm12 = vmand %vm961_vm11, %vm964_vm9 }
0x1b73   :  { %vm966_vm13 = vmor %vm960_vm10, %vm965_vm12 }
0x1b74   :  { %v968_v8 = vsel %vm966_vm13, %v955_v63, %v963_v3  ;;  %v967_v9 = vsel %vm966_vm13, %v954_v1, %v958_v58 }
0x1b75   :  { %975 = vrot.lane.b32.xlu0 %v968_v8, %s2230_s8  ;;  %970 = vrot.lane.b32.xlu1 %v967_v9, %s2230_s8 }
0x1b7e   :  { %v1100_v11 = vpop.f32.mrb[24].mxu1 }
0x1b7f   :  { %v1102_v13 = vpop.f32.mrb[25].mxu1  ;;  %v2592_v42 = vadd.f32 %v1100_v11, %v2373_v35 }
0x1b80   :  { %v1103_v19 = vadd.f32 %v1102_v13, %v2364_v21  ;;  %v1104_v20 = vpop.f32.mrb[26].mxu1 }
0x1b81   :  { %v1105_v24 = vpop.f32.mrb[27].mxu1 }
0x1b82   :  { %2145 = vtanh.f32 %v1103_v19 }
0x1b8c   :  { %v2146_v25 = vpop.eup %2145 }
0x1b8d   :  { %v1108_v26 = vpack.c.bf16 %v2146_v25, %v2146_v25 }
0x1b8f   :  { %1958 = vmatmul.mubr.msk.bf16.vlgmr.msra.gmra.mrb[28].mxu0 %vm91_vm1, %v1108_v26 }
0x1b90   :  { %1236 = vmatpush1.bf16.msra.mxu0 %v2343_v6  ;;  %1267 = vmatprep.mubr.bf16.mxu0 %v2227_v47 }
0x1b91   :  { %1237 = vmatprep.subr.bf16.mxu0 %v2349_v15 }
0x1b94   :  { %1238 = vmatpush1.bf16.msra.mxu0 %v2353_v17 }
0x1b95   :  { %1408 = vmatprep.subr.bf16.mxu0 %v2340_v2 }
0x1be7   :  { %v976_v27 = vpop.permute.xlu0 %975  ;;  %v971_v37 = vpop.permute.xlu1 %970 }
0x1be8   :  { %vm977_vm14 = vcmp.lt.s32.totalorder %v968_v8, %v976_v27  ;;  %vm973_vm15 = vcmp.gt.f32.partialorder %v967_v9, %v971_v37  ;;  %vm974_vm2 = vcmp.eq.f32.partialorder %v967_v9, %v971_v37 }
0x1be9   :  { %vm978_vm5 = vmand %vm974_vm2, %vm977_vm14 }
0x1bea   :  { %vm979_vm6 = vmor %vm973_vm15, %vm978_vm5 }
0x1beb   :  { %v981_v21 = vsel %vm979_vm6, %v968_v8, %v976_v27  ;;  %v980_v4 = vsel %vm979_vm6, %v967_v9, %v971_v37 }
0x1bec   :  { %988 = vrot.lane.b32.xlu0 %v981_v21, %s2232_s9  ;;  %983 = vrot.lane.b32.xlu1 %v980_v4, %s2232_s9 }
0x1c5e   :  { %v989_v28 = vpop.permute.xlu0 %988  ;;  %v984_v30 = vpop.permute.xlu1 %983 }
0x1c5f   :  { %vm990_vm7 = vcmp.lt.s32.totalorder %v981_v21, %v989_v28  ;;  %vm986_vm8 = vcmp.gt.f32.partialorder %v980_v4, %v984_v30  ;;  %vm987_vm9 = vcmp.eq.f32.partialorder %v980_v4, %v984_v30 }
0x1c60   :  { %vm991_vm10 = vmand %vm987_vm9, %vm990_vm7 }
0x1c61   :  { %vm992_vm11 = vmor %vm986_vm8, %vm991_vm10 }
0x1c62   :  { %v1146_v31 = vpop.f32.mrb[28].mxu0  ;;  %v2581_v32 = vsel %vm992_vm11, %v981_v21, %v989_v28 }
0x1c63   :  { %1153 = vperm.xlu1 %2104, %v2581_v32   ;;  %v1148_v43 = vpop.f32.mrb[29].mxu0 }
0x1c64   :  { %v1149_v33 = vpop.f32.mrb[30].mxu0 }
0x1c65   :  { %v1150_v34 = vpop.f32.mrb[31].mxu0 }
0x1ce2   :  { %v1154_v38 = vpop.permute.xlu1 %1153 }
0x1ce3   :  { %vm1155_vm12 = vcmp.eq.s32.totalorder %v2338_v60, %v1154_v38 }
0x1ce4   :  { %v1959_v40 = vsel %vm1155_vm12, 1.0, %v2223_v0 }
0x1ce5   :  { %v1158_v41 = vpack.c.bf16 %v1959_v40, %v1959_v40 }
0x1ce7   :  { %2055 = vmatmul.mubr.msk.bf16.vlgmr.msra.gmra.mrb[28].mxu1 %vm306_vm3, %v1158_v41 }
0x1ce8   :  { %2059 = vmatpush3.bf16.msra.mxu1 %v2345_v7  ;;  %2060 = vmatprep.mubr.msk.bf16.mxu1 %vm2224_vm0, %v2223_v0 }
0x1ce9   :  { %2064 = vmatprep.subr.bf16.mxu1 %v2223_v0 }
0x1dba   :  { %v1196_v23 = vpop.f32.mrb[28].mxu1 }
0x1dbb   :  { %v1197_v45 = vadd.f32 %v1196_v23, %v1146_v31  ;;  %v2056_v46 = vpop.f32.mrb[29].mxu1 }
0x1dbc   :  { %v1199_v61 = vpop.f32.mrb[30].mxu1 }
0x1dbd   :  { %v1202_v50 = vadd.f32 %v1197_v45, %v2592_v42  ;;  %v2057_v51 = vpop.f32.mrb[31].mxu1 }
0x1dbf   :  { %v1961_v53 = vmul.f32 -1.442695, %v1202_v50 }
0x1dc1   :  { %2147 = vpow2.f32 %v1961_v53 }
0x1dcb   :  { %v2148_v55 = vpop.eup %2147 }
0x1dcc   :  { %v1206_v56 = vadd.f32 1.0, %v2148_v55 }
0x1dce   :  { %2149 = vrcp.f32 %v1206_v56 }
0x1dd8   :  { %v2150_v57 = vpop.eup %2149 }
0x1dd9   :  { %v1209_v12 = vmul.f32 2.0, %v2150_v57  ;;  %v1211_v35 = vmul.f32 %v2150_v57, %v2146_v25 }
0x1ddb   :  { %v1962_v48 = vadd.f32 -1.0, %v1209_v12 }
0x1ddd   :  { %1213 = vrot.lane.b32.xlu0 %v1962_v48, %s2225_s0 }
0x1e4f   :  { %v1214_v59 = vpop.permute.xlu0 %1213 }
0x1e50   :  { %v1216_v49 = vmul.f32 %v2150_v57, %v1214_v59 }
0x1e52   :  { %1218 = vrot.lane.b32.xlu1 %v1216_v49, %s2226_s30 }
0x1ec4   :  { %v1219_v62 = vpop.permute.xlu1 %1218 }
0x1ec5   :  { %v2597_v52 = vadd.f32 %v1219_v62, %v1211_v35 }
0x1ec7   :  { %2151 = vtanh.f32 %v2597_v52 }
0x1ed1   :  { %v2152_v14 = vpop.eup %2151 }
0x1ed2   :  { %1224 = vrot.lane.b32.xlu0 %v2152_v14, %s2225_s0 }
0x1f44   :  { %v1225_v63 = vpop.permute.xlu0 %1224 }
0x1f45   :  { %v1227_v1 = vmul.f32 %v2150_v57, %v1225_v63 }
0x1f47   :  { %v1228_v3 = vpack.c.bf16 %v1227_v1, %v1227_v1 }
0x1f49   :  { %1230 = vrot.lane.b32.xlu1 %v1228_v3, %s2226_s30 }
0x1fbb   :  { %v1231_v58 = vpop.permute.xlu1 %1230 }
0x1fbc   :  { %1963 = vmatmul.mubr.msk.bf16.vlgmr.msra.gmra.mrb[32].mxu0 %vm91_vm1, %v1231_v58 }
0x1fbd   :  { %1409 = vmatpush1.bf16.msra.mxu0 %v2343_v6  ;;  %1440 = vmatprep.mubr.bf16.mxu0 %v2227_v47 }
0x1fbe   :  { %1410 = vmatprep.subr.bf16.mxu0 %v2349_v15 }
0x1fc1   :  { %1411 = vmatpush1.bf16.msra.mxu0 %v2353_v17 }
0x1fc2   :  { %1581 = vmatprep.subr.bf16.mxu0 %v2340_v2 }
0x208f   :  { %v1269_v8 = vpop.f32.mrb[32].mxu0 }
0x2090   :  { %v1271_v9 = vpop.f32.mrb[33].mxu0 }
0x2091   :  { %v2609_v11 = vadd.f32 %v1271_v9, %v2394_v5  ;;  %v1273_v13 = vpop.f32.mrb[34].mxu0  ;;  %v2651_v9 = vld [vmem:[#allocation2 + $0x150] ss:$0 sm:$0xff] }
0x2092   :  { %v1274_v19 = vpop.f32.mrb[35].mxu0 }
0x2093   :  { %1278 = vrot.lane.b32.xlu0 %v2609_v11, %s2228_s2 }
0x2105   :  { %v1279_v20 = vpop.permute.xlu0 %1278 }
0x2106   :  { %vm1281_vm13 = vcmp.gt.f32.partialorder %v2609_v11, %v1279_v20  ;;  %vm1282_vm14 = vcmp.eq.f32.partialorder %v2609_v11, %v1279_v20 }
0x2107   :  { %vm1283_vm15 = vmand %vm1282_vm14, %vm2407_vm4 }
0x2108   :  { %vm1284_vm2 = vmor %vm1281_vm13, %vm1283_vm15 }
0x2109   :  { %v1286_v24 = vsel %vm1284_vm2, %v2338_v60, %v2403_v16  ;;  %v1285_v5 = vsel %vm1284_vm2, %v2609_v11, %v1279_v20 }
0x210a   :  { %1293 = vrot.lane.b32.xlu0 %v1286_v24, %s2229_s7  ;;  %1288 = vrot.lane.b32.xlu1 %v1285_v5, %s2229_s7 }
0x217c   :  { %v1294_v25 = vpop.permute.xlu0 %1293  ;;  %v1289_v26 = vpop.permute.xlu1 %1288 }
0x217d   :  { %vm1295_vm5 = vcmp.lt.s32.totalorder %v1286_v24, %v1294_v25  ;;  %vm1291_vm6 = vcmp.gt.f32.partialorder %v1285_v5, %v1289_v26  ;;  %vm1292_vm7 = vcmp.eq.f32.partialorder %v1285_v5, %v1289_v26 }
0x217e   :  { %vm1296_vm8 = vmand %vm1292_vm7, %vm1295_vm5 }
0x217f   :  { %vm1297_vm9 = vmor %vm1291_vm6, %vm1296_vm8 }
0x2180   :  { %v1299_v27 = vsel %vm1297_vm9, %v1286_v24, %v1294_v25  ;;  %v1298_v37 = vsel %vm1297_vm9, %v1285_v5, %v1289_v26 }
0x2181   :  { %1306 = vrot.lane.b32.xlu0 %v1299_v27, %s2230_s8  ;;  %1301 = vrot.lane.b32.xlu1 %v1298_v37, %s2230_s8 }
0x21f3   :  { %v1307_v21 = vpop.permute.xlu0 %1306  ;;  %v1302_v4 = vpop.permute.xlu1 %1301 }
0x21f4   :  { %vm1308_vm10 = vcmp.lt.s32.totalorder %v1299_v27, %v1307_v21  ;;  %vm1304_vm11 = vcmp.gt.f32.partialorder %v1298_v37, %v1302_v4  ;;  %vm1305_vm12 = vcmp.eq.f32.partialorder %v1298_v37, %v1302_v4 }
0x21f5   :  { %vm1309_vm13 = vmand %vm1305_vm12, %vm1308_vm10 }
0x21f6   :  { %vm1310_vm14 = vmor %vm1304_vm11, %vm1309_vm13 }
0x21f7   :  { %v1312_v28 = vsel %vm1310_vm14, %v1299_v27, %v1307_v21  ;;  %v1311_v30 = vsel %vm1310_vm14, %v1298_v37, %v1302_v4 }
0x21f8   :  { %1319 = vrot.lane.b32.xlu0 %v1312_v28, %s2232_s9  ;;  %1314 = vrot.lane.b32.xlu1 %v1311_v30, %s2232_s9 }
0x226a   :  { %v1320_v31 = vpop.permute.xlu0 %1319  ;;  %v1315_v43 = vpop.permute.xlu1 %1314 }
0x226b   :  { %vm1321_vm15 = vcmp.lt.s32.totalorder %v1312_v28, %v1320_v31  ;;  %vm1317_vm2 = vcmp.gt.f32.partialorder %v1311_v30, %v1315_v43  ;;  %vm1318_vm5 = vcmp.eq.f32.partialorder %v1311_v30, %v1315_v43 }
0x226c   :  { %vm1322_vm6 = vmand %vm1318_vm5, %vm1321_vm15 }
0x226d   :  { %vm1323_vm7 = vmor %vm1317_vm2, %vm1322_vm6 }
0x226e   :  { %v2626_v33 = vsel %vm1323_vm7, %v1312_v28, %v1320_v31 }
0x226f   :  { %1326 = vperm.xlu1 %2104, %v2626_v33  }
0x22ee   :  { %v1327_v34 = vpop.permute.xlu1 %1326 }
0x22ef   :  { %vm1328_vm8 = vcmp.eq.s32.totalorder %v2338_v60, %v1327_v34 }
0x22f0   :  { %v1964_v38 = vsel %vm1328_vm8, 1.0, %v2223_v0 }
0x22f1   :  { %v1331_v40 = vpack.c.bf16 %v1964_v38, %v1964_v38 }
0x22f3   :  { %2061 = vmatmul.mubr.msk.bf16.vlgmr.msra.gmra.mrb[32].mxu1 %vm306_vm3, %v1331_v40 }
0x22f4   :  { %2065 = vmatpush3.bf16.msra.mxu1 %v2345_v7  ;;  %2066 = vmatprep.mubr.msk.bf16.mxu1 %vm2224_vm0, %v2223_v0 }
0x22f5   :  { %2070 = vmatprep.subr.bf16.mxu1 %v2223_v0 }
0x23c6   :  { %v1369_v41 = vpop.f32.mrb[32].mxu1 }
0x23c7   :  { %v1370_v23 = vadd.f32 %v1369_v41, %v1269_v8  ;;  %v2062_v45 = vpop.f32.mrb[33].mxu1 }
0x23c8   :  { %v1372_v46 = vpop.f32.mrb[34].mxu1 }
0x23c9   :  { %v1375_v61 = vadd.f32 %v1370_v23, %v2592_v42  ;;  %v2063_v50 = vpop.f32.mrb[35].mxu1 }
0x23cb   :  { %v1966_v51 = vmul.f32 -1.442695, %v1375_v61 }
0x23cd   :  { %2153 = vpow2.f32 %v1966_v51 }
0x23d7   :  { %v2154_v53 = vpop.eup %2153 }
0x23d8   :  { %v1379_v55 = vadd.f32 1.0, %v2154_v53 }
0x23da   :  { %2155 = vrcp.f32 %v1379_v55 }
0x23e4   :  { %v2156_v56 = vpop.eup %2155 }
0x23e5   :  { %v1382_v57 = vmul.f32 2.0, %v2156_v56  ;;  %v1384_v49 = vmul.f32 %v2156_v56, %v2597_v52 }
0x23e7   :  { %v1967_v12 = vadd.f32 -1.0, %v1382_v57 }
0x23e9   :  { %1386 = vrot.lane.b32.xlu0 %v1967_v12, %s2225_s0 }
0x245b   :  { %v1387_v48 = vpop.permute.xlu0 %1386 }
0x245c   :  { %v1389_v59 = vmul.f32 %v2156_v56, %v1387_v48 }
0x245e   :  { %1391 = vrot.lane.b32.xlu1 %v1389_v59, %s2226_s30 }
0x24d0   :  { %v1392_v35 = vpop.permute.xlu1 %1391 }
0x24d1   :  { %v2640_v62 = vadd.f32 %v1392_v35, %v1384_v49 }
0x24d3   :  { %2157 = vtanh.f32 %v2640_v62 }
0x24dd   :  { %v2158_v14 = vpop.eup %2157 }
0x24de   :  { %1397 = vrot.lane.b32.xlu0 %v2158_v14, %s2225_s0 }
0x2550   :  { %v1398_v63 = vpop.permute.xlu0 %1397 }
0x2551   :  { %v1400_v1 = vmul.f32 %v2156_v56, %v1398_v63 }
0x2553   :  { %v1401_v3 = vpack.c.bf16 %v1400_v1, %v1400_v1 }
0x2555   :  { %1403 = vrot.lane.b32.xlu1 %v1401_v3, %s2226_s30 }
0x25c7   :  { %v1404_v58 = vpop.permute.xlu1 %1403 }
0x25c8   :  { %1968 = vmatmul.mubr.msk.bf16.vlgmr.msra.gmra.mrb[36].mxu0 %vm91_vm1, %v1404_v58 }
0x25c9   :  { %1582 = vmatpush1.bf16.msra.mxu0 %v2343_v6  ;;  %1613 = vmatprep.mubr.bf16.mxu0 %v2227_v47 }
0x25ca   :  { %1583 = vmatprep.subr.bf16.mxu0 %v2349_v15 }
0x25cd   :  { %1584 = vmatpush1.bf16.msra.mxu0 %v2353_v17 }
0x25ce   :  { %1754 = vmatprep.subr.bf16.mxu0 %v2340_v2 }
0x269b   :  { %v1442_v52 = vpop.f32.mrb[36].mxu0 }
0x269c   :  { %v1444_v8 = vpop.f32.mrb[37].mxu0 }
0x269d   :  { %v2654_v13 = vadd.f32 %v2651_v9, %v1444_v8  ;;  %v1446_v19 = vpop.f32.mrb[38].mxu0 }
0x269e   :  { %v1447_v20 = vpop.f32.mrb[39].mxu0 }
0x269f   :  { %1451 = vrot.lane.b32.xlu0 %v2654_v13, %s2228_s2 }
0x2711   :  { %v1452_v24 = vpop.permute.xlu0 %1451 }
0x2712   :  { %vm1454_vm9 = vcmp.gt.f32.partialorder %v2654_v13, %v1452_v24  ;;  %vm1455_vm10 = vcmp.eq.f32.partialorder %v2654_v13, %v1452_v24 }
0x2713   :  { %vm1456_vm11 = vmand %vm1455_vm10, %vm2407_vm4 }
0x2714   :  { %vm1457_vm12 = vmor %vm1454_vm9, %vm1456_vm11 }
0x2715   :  { %v1459_v2 = vsel %vm1457_vm12, %v2338_v60, %v2403_v16  ;;  %v1458_v5 = vsel %vm1457_vm12, %v2654_v13, %v1452_v24 }
0x2716   :  { %1466 = vrot.lane.b32.xlu0 %v1459_v2, %s2229_s7  ;;  %1461 = vrot.lane.b32.xlu1 %v1458_v5, %s2229_s7 }
0x2788   :  { %v1467_v25 = vpop.permute.xlu0 %1466  ;;  %v1462_v26 = vpop.permute.xlu1 %1461 }
0x2789   :  { %vm1468_vm13 = vcmp.lt.s32.totalorder %v1459_v2, %v1467_v25  ;;  %vm1464_vm14 = vcmp.gt.f32.partialorder %v1458_v5, %v1462_v26  ;;  %vm1465_vm15 = vcmp.eq.f32.partialorder %v1458_v5, %v1462_v26 }
0x278a   :  { %vm1469_vm2 = vmand %vm1465_vm15, %vm1468_vm13 }
0x278b   :  { %vm1470_vm5 = vmor %vm1464_vm14, %vm1469_vm2 }
0x278c   :  { %v1472_v27 = vsel %vm1470_vm5, %v1459_v2, %v1467_v25  ;;  %v1471_v37 = vsel %vm1470_vm5, %v1458_v5, %v1462_v26 }
0x278d   :  { %1479 = vrot.lane.b32.xlu0 %v1472_v27, %s2230_s8  ;;  %1474 = vrot.lane.b32.xlu1 %v1471_v37, %s2230_s8 }
0x27ff   :  { %v1480_v21 = vpop.permute.xlu0 %1479  ;;  %v1475_v4 = vpop.permute.xlu1 %1474 }
0x2800   :  { %vm1481_vm6 = vcmp.lt.s32.totalorder %v1472_v27, %v1480_v21  ;;  %vm1477_vm7 = vcmp.gt.f32.partialorder %v1471_v37, %v1475_v4  ;;  %vm1478_vm8 = vcmp.eq.f32.partialorder %v1471_v37, %v1475_v4 }
0x2801   :  { %vm1482_vm9 = vmand %vm1478_vm8, %vm1481_vm6 }
0x2802   :  { %vm1483_vm10 = vmor %vm1477_vm7, %vm1482_vm9 }
0x2803   :  { %v1485_v28 = vsel %vm1483_vm10, %v1472_v27, %v1480_v21  ;;  %v1484_v30 = vsel %vm1483_vm10, %v1471_v37, %v1475_v4 }
0x2804   :  { %1492 = vrot.lane.b32.xlu0 %v1485_v28, %s2232_s9  ;;  %1487 = vrot.lane.b32.xlu1 %v1484_v30, %s2232_s9 }
0x2876   :  { %v1493_v31 = vpop.permute.xlu0 %1492  ;;  %v1488_v43 = vpop.permute.xlu1 %1487 }
0x2877   :  { %vm1494_vm11 = vcmp.lt.s32.totalorder %v1485_v28, %v1493_v31  ;;  %vm1490_vm12 = vcmp.gt.f32.partialorder %v1484_v30, %v1488_v43  ;;  %vm1491_vm13 = vcmp.eq.f32.partialorder %v1484_v30, %v1488_v43 }
0x2878   :  { %vm1495_vm14 = vmand %vm1491_vm13, %vm1494_vm11 }
0x2879   :  { %vm1496_vm15 = vmor %vm1490_vm12, %vm1495_vm14 }
0x287a   :  { %v2671_v34 = vsel %vm1496_vm15, %v1485_v28, %v1493_v31 }
0x287b   :  { %1499 = vperm.xlu1 %2104, %v2671_v34  }
0x28fa   :  { %v1500_v38 = vpop.permute.xlu1 %1499 }
0x28fb   :  { %vm1501_vm2 = vcmp.eq.s32.totalorder %v2338_v60, %v1500_v38 }
0x28fc   :  { %v1969_v40 = vsel %vm1501_vm2, 1.0, %v2223_v0 }
0x28fd   :  { %v1504_v41 = vpack.c.bf16 %v1969_v40, %v1969_v40 }
0x28ff   :  { %2067 = vmatmul.mubr.msk.bf16.vlgmr.msra.gmra.mrb[36].mxu1 %vm306_vm3, %v1504_v41 }
0x2900   :  { %2071 = vmatpush3.bf16.msra.mxu1 %v2345_v7  ;;  %2072 = vmatprep.mubr.msk.bf16.mxu1 %vm2224_vm0, %v2223_v0 }
0x29d2   :  { %v1542_v23 = vpop.f32.mrb[36].mxu1 }
0x29d3   :  { %v1543_v45 = vadd.f32 %v1542_v23, %v1442_v52  ;;  %v2068_v46 = vpop.f32.mrb[37].mxu1 }
0x29d4   :  { %v1545_v61 = vpop.f32.mrb[38].mxu1 }
0x29d5   :  { %v1548_v50 = vadd.f32 %v1543_v45, %v2592_v42  ;;  %v2069_v51 = vpop.f32.mrb[39].mxu1 }
0x29d7   :  { %v1971_v53 = vmul.f32 -1.442695, %v1548_v50 }
0x29d9   :  { %2159 = vpow2.f32 %v1971_v53 }
0x29e3   :  { %v2160_v55 = vpop.eup %2159 }
0x29e4   :  { %v1552_v56 = vadd.f32 1.0, %v2160_v55 }
0x29e6   :  { %2161 = vrcp.f32 %v1552_v56 }
0x29f0   :  { %v2162_v57 = vpop.eup %2161 }
0x29f1   :  { %v1555_v12 = vmul.f32 2.0, %v2162_v57  ;;  %v1557_v49 = vmul.f32 %v2162_v57, %v2640_v62 }
0x29f3   :  { %v1972_v48 = vadd.f32 -1.0, %v1555_v12 }
0x29f5   :  { %1559 = vrot.lane.b32.xlu0 %v1972_v48, %s2225_s0 }
0x2a67   :  { %v1560_v7 = vpop.permute.xlu0 %1559 }
0x2a68   :  { %v1562_v59 = vmul.f32 %v2162_v57, %v1560_v7 }
0x2a6a   :  { %1564 = vrot.lane.b32.xlu1 %v1562_v59, %s2226_s30 }
0x2adc   :  { %v1565_v35 = vpop.permute.xlu1 %1564 }
0x2add   :  { %v2684_v14 = vadd.f32 %v1565_v35, %v1557_v49 }
0x2adf   :  { %2163 = vtanh.f32 %v2684_v14 }
0x2ae9   :  { %v2164_v63 = vpop.eup %2163 }
0x2aea   :  { %1570 = vrot.lane.b32.xlu0 %v2164_v63, %s2225_s0 }
0x2b5c   :  { %v1571_v1 = vpop.permute.xlu0 %1570 }
0x2b5d   :  { %v1573_v3 = vmul.f32 %v2162_v57, %v1571_v1 }
0x2b5f   :  { %v1574_v58 = vpack.c.bf16 %v1573_v3, %v1573_v3 }
0x2b61   :  { %1576 = vrot.lane.b32.xlu1 %v1574_v58, %s2226_s30 }
0x2bd3   :  { %v1577_v52 = vpop.permute.xlu1 %1576 }
0x2bd4   :  { %1973 = vmatmul.mubr.msk.bf16.vlgmr.msra.gmra.mrb[40].mxu0 %vm91_vm1, %v1577_v52 }
0x2bd5   :  { %1755 = vmatpush1.bf16.msra.mxu0 %v2343_v6  ;;  %1786 = vmatprep.mubr.bf16.mxu0 %v2227_v47 }
0x2bd6   :  { %1756 = vmatprep.subr.bf16.mxu0 %v2349_v15 }
0x2bd9   :  { %1757 = vmatpush1.bf16.msra.mxu0 %v2353_v17 }
0x2ca7   :  { %v1615_v62 = vpop.f32.mrb[40].mxu0 }
0x2ca8   :  { %v1617_v8 = vpop.f32.mrb[41].mxu0 }
0x2ca9   :  { %v2695_v19 = vadd.f32 %v2651_v9, %v1617_v8  ;;  %v1619_v20 = vpop.f32.mrb[42].mxu0 }
0x2caa   :  { %v1620_v24 = vpop.f32.mrb[43].mxu0 }
0x2cab   :  { %1624 = vrot.lane.b32.xlu0 %v2695_v19, %s2228_s2 }
0x2d1d   :  { %v1625_v2 = vpop.permute.xlu0 %1624 }
0x2d1e   :  { %vm1627_vm0 = vcmp.gt.f32.partialorder %v2695_v19, %v1625_v2  ;;  %vm1628_vm5 = vcmp.eq.f32.partialorder %v2695_v19, %v1625_v2 }
0x2d1f   :  { %vm1629_vm6 = vmand %vm1628_vm5, %vm2407_vm4 }
0x2d20   :  { %vm1630_vm7 = vmor %vm1627_vm0, %vm1629_vm6 }
0x2d21   :  { %v1632_v47 = vsel %vm1630_vm7, %v2338_v60, %v2403_v16  ;;  %v1631_v6 = vsel %vm1630_vm7, %v2695_v19, %v1625_v2 }
0x2d22   :  { %1639 = vrot.lane.b32.xlu0 %v1632_v47, %s2229_s7  ;;  %1634 = vrot.lane.b32.xlu1 %v1631_v6, %s2229_s7 }
0x2d94   :  { %v1640_v15 = vpop.permute.xlu0 %1639  ;;  %v1635_v17 = vpop.permute.xlu1 %1634 }
0x2d95   :  { %vm1641_vm8 = vcmp.lt.s32.totalorder %v1632_v47, %v1640_v15  ;;  %vm1637_vm9 = vcmp.gt.f32.partialorder %v1631_v6, %v1635_v17  ;;  %vm1638_vm10 = vcmp.eq.f32.partialorder %v1631_v6, %v1635_v17 }
0x2d96   :  { %vm1642_vm11 = vmand %vm1638_vm10, %vm1641_vm8 }
0x2d97   :  { %vm1643_vm12 = vmor %vm1637_vm9, %vm1642_vm11 }
0x2d98   :  { %v1645_v5 = vsel %vm1643_vm12, %v1632_v47, %v1640_v15  ;;  %v1644_v25 = vsel %vm1643_vm12, %v1631_v6, %v1635_v17 }
0x2d99   :  { %1652 = vrot.lane.b32.xlu0 %v1645_v5, %s2230_s8  ;;  %1647 = vrot.lane.b32.xlu1 %v1644_v25, %s2230_s8 }
0x2e0b   :  { %v1653_v26 = vpop.permute.xlu0 %1652  ;;  %v1648_v27 = vpop.permute.xlu1 %1647 }
0x2e0c   :  { %vm1654_vm13 = vcmp.lt.s32.totalorder %v1645_v5, %v1653_v26  ;;  %vm1650_vm14 = vcmp.gt.f32.partialorder %v1644_v25, %v1648_v27  ;;  %vm1651_vm15 = vcmp.eq.f32.partialorder %v1644_v25, %v1648_v27 }
0x2e0d   :  { %vm1655_vm2 = vmand %vm1651_vm15, %vm1654_vm13 }
0x2e0e   :  { %vm1656_vm0 = vmor %vm1650_vm14, %vm1655_vm2 }
0x2e0f   :  { %v1658_v37 = vsel %vm1656_vm0, %v1645_v5, %v1653_v26  ;;  %v1657_v21 = vsel %vm1656_vm0, %v1644_v25, %v1648_v27 }
0x2e10   :  { %1665 = vrot.lane.b32.xlu0 %v1658_v37, %s2232_s9  ;;  %1660 = vrot.lane.b32.xlu1 %v1657_v21, %s2232_s9 }
0x2e82   :  { %v1666_v4 = vpop.permute.xlu0 %1665  ;;  %v1661_v28 = vpop.permute.xlu1 %1660 }
0x2e83   :  { %vm1667_vm5 = vcmp.lt.s32.totalorder %v1658_v37, %v1666_v4  ;;  %vm1663_vm6 = vcmp.gt.f32.partialorder %v1657_v21, %v1661_v28  ;;  %vm1664_vm7 = vcmp.eq.f32.partialorder %v1657_v21, %v1661_v28 }
0x2e84   :  { %vm1668_vm8 = vmand %vm1664_vm7, %vm1667_vm5 }
0x2e85   :  { %vm1669_vm9 = vmor %vm1663_vm6, %vm1668_vm8 }
0x2e86   :  { %v2712_v30 = vsel %vm1669_vm9, %v1658_v37, %v1666_v4 }
0x2e87   :  { %1672 = vperm.xlu1 %2104, %v2712_v30  }
0x2f06   :  { %v1673_v31 = vpop.permute.xlu1 %1672 }
0x2f07   :  { %vm1674_vm10 = vcmp.eq.s32.totalorder %v2338_v60, %v1673_v31 }
0x2f08   :  { %v1974_v43 = vsel %vm1674_vm10, 1.0, %v2223_v0 }
0x2f09   :  { %v1677_v38 = vpack.c.bf16 %v1974_v43, %v1974_v43 }
0x2f0b   :  { %2073 = vmatmul.mubr.msk.bf16.vlgmr.msra.gmra.mrb[40].mxu1 %vm306_vm3, %v1677_v38 }
0x2fde   :  { %v1715_v40 = vpop.f32.mrb[40].mxu1 }
0x2fdf   :  { %v1716_v41 = vadd.f32 %v1715_v40, %v1615_v62  ;;  %v2074_v23 = vpop.f32.mrb[41].mxu1 }
0x2fe0   :  { %v1718_v45 = vpop.f32.mrb[42].mxu1 }
0x2fe1   :  { %v1721_v46 = vadd.f32 %v1716_v41, %v2592_v42  ;;  %v2075_v61 = vpop.f32.mrb[43].mxu1 }
0x2fe3   :  { %v1976_v50 = vmul.f32 -1.442695, %v1721_v46 }
0x2fe5   :  { %2165 = vpow2.f32 %v1976_v50 }
0x2fef   :  { %v2166_v51 = vpop.eup %2165 }
0x2ff0   :  { %v1725_v53 = vadd.f32 1.0, %v2166_v51 }
0x2ff2   :  { %2167 = vrcp.f32 %v1725_v53 }
0x2ffc   :  { %v2168_v55 = vpop.eup %2167 }
0x2ffd   :  { %v1728_v56 = vmul.f32 2.0, %v2168_v55  ;;  %v1730_v48 = vmul.f32 %v2168_v55, %v2684_v14 }
0x2fff   :  { %v1977_v57 = vadd.f32 -1.0, %v1728_v56 }
0x3001   :  { %1732 = vrot.lane.b32.xlu0 %v1977_v57, %s2225_s0 }
0x3073   :  { %v1733_v0 = vpop.permute.xlu0 %1732 }
0x3074   :  { %v1735_v12 = vmul.f32 %v2168_v55, %v1733_v0 }
0x3076   :  { %1737 = vrot.lane.b32.xlu1 %v1735_v12, %s2226_s30 }
0x30e8   :  { %v1738_v7 = vpop.permute.xlu1 %1737 }
0x30e9   :  { %v1740_v59 = vadd.f32 %v1738_v7, %v1730_v48 }
0x30eb   :  { %2169 = vtanh.f32 %v1740_v59 }
0x30f5   :  { %v2170_v42 = vpop.eup %2169 }
0x30f6   :  { %1743 = vrot.lane.b32.xlu0 %v2170_v42, %s2225_s0 }
0x3168   :  { %v1744_v49 = vpop.permute.xlu0 %1743 }
0x3169   :  { %v1746_v35 = vmul.f32 %v2168_v55, %v1744_v49 }
0x316b   :  { %v1747_v63 = vpack.c.bf16 %v1746_v35, %v1746_v35 }
0x316d   :  { %1749 = vrot.lane.b32.xlu1 %v1747_v63, %s2226_s30 }
0x31df   :  { %v1750_v1 = vpop.permute.xlu1 %1749 }
0x31e0   :  { %1978 = vmatmul.mubr.msk.bf16.vlgmr.msra.gmra.mrb[44].mxu0 %vm91_vm1, %v1750_v1 }
0x32b3   :  { %v1788_v3 = vpop.f32.mrb[44].mxu0 }
0x32b4   :  { %v1789_v58 = vpop.f32.mrb[45].mxu0 }
0x32b5   :  { %v1794_v52 = vadd.f32 %v2651_v9, %v1789_v58  ;;  %v1791_v62 = vpop.f32.mrb[46].mxu0 }
0x32b6   :  { %v1792_v14 = vpop.f32.mrb[47].mxu0 }
0x32b7   :  { %1796 = vrot.lane.b32.xlu0 %v1794_v52, %s2228_s2 }
0x3329   :  { %v1797_v8 = vpop.permute.xlu0 %1796 }
0x332a   :  { %vm1799_vm11 = vcmp.gt.f32.partialorder %v1794_v52, %v1797_v8  ;;  %vm1800_vm12 = vcmp.eq.f32.partialorder %v1794_v52, %v1797_v8 }
0x332b   :  { %vm1801_vm13 = vmand %vm1800_vm12, %vm2407_vm4 }
0x332c   :  { %vm1802_vm14 = vmor %vm1799_vm11, %vm1801_vm13 }
0x332d   :  { %v1804_v20 = vsel %vm1802_vm14, %v2338_v60, %v2403_v16  ;;  %v1803_v24 = vsel %vm1802_vm14, %v1794_v52, %v1797_v8 }
0x332e   :  { %1811 = vrot.lane.b32.xlu0 %v1804_v20, %s2229_s7  ;;  %1806 = vrot.lane.b32.xlu1 %v1803_v24, %s2229_s7 }
0x33a0   :  { %v1812_v9 = vpop.permute.xlu0 %1811  ;;  %v1807_v2 = vpop.permute.xlu1 %1806 }
0x33a1   :  { %vm1813_vm15 = vcmp.lt.s32.totalorder %v1804_v20, %v1812_v9  ;;  %vm1809_vm2 = vcmp.gt.f32.partialorder %v1803_v24, %v1807_v2  ;;  %vm1810_vm0 = vcmp.eq.f32.partialorder %v1803_v24, %v1807_v2 }
0x33a2   :  { %vm1814_vm5 = vmand %vm1810_vm0, %vm1813_vm15  ;;  %vm1868_vm0 = vcmask 523264  }
0x33a3   :  { %vm1815_vm6 = vmor %vm1809_vm2, %vm1814_vm5  ;;  %vm1866_vm2 = vcmask 392192   ;;  %vm1870_vm5 = vcmask 654336  }
0x33a4   :  { %v1817_v47 = vsel %vm1815_vm6, %v1804_v20, %v1812_v9  ;;  %v1816_v6 = vsel %vm1815_vm6, %v1803_v24, %v1807_v2  ;;  %vm1872_vm6 = vcmask 785408  }
0x33a5   :  { %1824 = vrot.lane.b32.xlu0 %v1817_v47, %s2230_s8  ;;  %1819 = vrot.lane.b32.xlu1 %v1816_v6, %s2230_s8 }
0x3417   :  { %v1825_v18 = vpop.permute.xlu0 %1824  ;;  %v1820_v60 = vpop.permute.xlu1 %1819 }
0x3418   :  { %vm1826_vm4 = vcmp.lt.s32.totalorder %v1817_v47, %v1825_v18  ;;  %vm1822_vm7 = vcmp.gt.f32.partialorder %v1816_v6, %v1820_v60  ;;  %vm1823_vm8 = vcmp.eq.f32.partialorder %v1816_v6, %v1820_v60 }
0x3419   :  { %vm1827_vm9 = vmand %vm1823_vm8, %vm1826_vm4  ;;  %vm1874_vm4 = vcmask 916480   ;;  %vm1899_vm8 = vcmask 31744  }
0x341a   :  { %vm1828_vm10 = vmor %vm1822_vm7, %vm1827_vm9  ;;  %vm1897_vm7 = vcmask 23552   ;;  %vm1901_vm9 = vcmask 39936  }
0x341b   :  { %v1830_v16 = vsel %vm1828_vm10, %v1817_v47, %v1825_v18  ;;  %v1829_v15 = vsel %vm1828_vm10, %v1816_v6, %v1820_v60  ;;  %vm1903_vm10 = vcmask 48128  }
0x341c   :  { %1837 = vrot.lane.b32.xlu0 %v1830_v16, %s2232_s9  ;;  %1832 = vrot.lane.b32.xlu1 %v1829_v15, %s2232_s9 }
0x3420   :  { %1879 = vrot.lane.b32.xlu0 %v2468_v44, %s2233_s10  ;;  %1877 = vrot.lane.b32.xlu1 %v2424_v36, %s2234_s11 }
0x3424   :  { %1881 = vrot.lane.b32.xlu0 %v2513_v54, %s2235_s12  ;;  %1843 = vrot.lane.b32.xlu1 %v2451_v22, %s2222_s26 }
0x3428   :  { %1883 = vrot.lane.b32.xlu0 %v2581_v32, %s2236_s13  ;;  %1846 = vrot.lane.b32.xlu1 %v2496_v29, %s2226_s30 }
0x342c   :  { %1885 = vrot.lane.b32.xlu0 %v2626_v33, %s2237_s14  ;;  %1849 = vrot.lane.b32.xlu1 %v2552_v39, %s2238_s15 }
0x3430   :  { %1887 = vrot.lane.b32.xlu0 %v2671_v34, %s2239_s16  ;;  %1852 = vrot.lane.b32.xlu1 %v2609_v11, %s2225_s0 }
0x3434   :  { %1889 = vrot.lane.b32.xlu0 %v2712_v30, %s2240_s17  ;;  %1855 = vrot.lane.b32.xlu1 %v2654_v13, %s2241_s18 }
0x3438   :  { %1858 = vrot.lane.b32.xlu1 %v2695_v19, %s2242_s19 }
0x343c   :  { %1861 = vrot.lane.b32.xlu1 %v1794_v52, %s2243_s20 }
0x348e   :  { %v1838_v36 = vpop.permute.xlu0 %1837  ;;  %v1833_v22 = vpop.permute.xlu1 %1832 }
0x348f   :  { %vm1839_vm11 = vcmp.lt.s32.totalorder %v1830_v16, %v1838_v36  ;;  %vm1835_vm12 = vcmp.gt.f32.partialorder %v1829_v15, %v1833_v22  ;;  %vm1836_vm13 = vcmp.eq.f32.partialorder %v1829_v15, %v1833_v22 }
0x3490   :  { %vm1840_vm14 = vmand %vm1836_vm13, %vm1839_vm11  ;;  %vm1905_vm11 = vcmask 56320  }
0x3491   :  { %vm1841_vm15 = vmor %vm1835_vm12, %vm1840_vm14  ;;  %vm1907_vm12 = vcmask 64512  }
0x3492   :  { %v1878_v44 = vpop.permute.xlu1 %1877  ;;  %v1842_v29 = vsel %vm1841_vm15, %v1830_v16, %v1838_v36  ;;  %v1880_v21 = vpop.permute.xlu0 %1879 }
0x3493   :  { %1891 = vrot.lane.b32.xlu0 %v1842_v29, %s2244_s21 }
0x3496   :  { %v1844_v54 = vpop.permute.xlu1 %1843  ;;  %v1882_v4 = vpop.permute.xlu0 %1881 }
0x3497   :  { %v1864_v13 = vsel %vm306_vm3, %v2399_v10, %v1844_v54  ;;  %vm1895_vm3 = vcmask 15360  }
0x349a   :  { %v1847_v39 = vpop.permute.xlu1 %1846  ;;  %v1884_v10 = vpop.permute.xlu0 %1883 }
0x349b   :  { %v1865_v34 = vsel %vm91_vm1, %v1864_v13, %v1847_v39  ;;  %vm1893_vm1 = vcmask 7168  }
0x349c   :  { %v1894_v31 = vsel %vm1893_vm1, %v1878_v44, %v1880_v21 }
0x349d   :  { %v1896_v43 = vsel %vm1895_vm3, %v1894_v31, %v1882_v4 }
0x349e   :  { %v1850_v32 = vpop.permute.xlu1 %1849  ;;  %v1886_v28 = vpop.permute.xlu0 %1885  ;;  %v1898_v40 = vsel %vm1897_vm7, %v1896_v43, %v1884_v10 }
0x349f   :  { %v1867_v17 = vsel %vm1866_vm2, %v1865_v34, %v1850_v32  ;;  %v1900_v41 = vsel %vm1899_vm8, %v1898_v40, %v1886_v28 }
0x34a2   :  { %v1853_v11 = vpop.permute.xlu1 %1852  ;;  %v1888_v30 = vpop.permute.xlu0 %1887 }
0x34a3   :  { %v1869_v5 = vsel %vm1868_vm0, %v1867_v17, %v1853_v11  ;;  %v1902_v23 = vsel %vm1901_vm9, %v1900_v41, %v1888_v30 }
0x34a6   :  { %v1856_v33 = vpop.permute.xlu1 %1855  ;;  %v1890_v38 = vpop.permute.xlu0 %1889 }
0x34a7   :  { %v1871_v25 = vsel %vm1870_vm5, %v1869_v5, %v1856_v33  ;;  %v1904_v45 = vsel %vm1903_vm10, %v1902_v23, %v1890_v38 }
0x34aa   :  { %v1859_v19 = vpop.permute.xlu1 %1858 }
0x34ab   :  { %v1873_v26 = vsel %vm1872_vm6, %v1871_v25, %v1859_v19 }
0x34ae   :  { %v1862_v27 = vpop.permute.xlu1 %1861 }
0x34af   :  { %v1875_v37 = vsel %vm1874_vm4, %v1873_v26, %v1862_v27 }
0x34b0   :  { %1876 = vst [vmem:[%s2774_s3] sm:$0xff] %v1875_v37  ;;  %s2194_s3 = scalar_lea.vmem %s1918_s25, 128 }
0x34b1   :  { %p2195_p8 = scmp.ne.s32.totalorder %s1918_s25, %s2194_s3  ;;  %p2200_p10 = scmp.lt.s32.totalorder %s2194_s3, %s2194_s3 }
0x34b3   :  { %p2201_p11 = por %p2200_p10, %p2199_p9 }
0x34b5   :  { %p2202_p12 = pnand %p2201_p11, %p2195_p8 }
0x3505   :  { %v1892_v46 = vpop.permute.xlu0 %1891 }
0x3506   :  { %v1906_v61 = vsel %vm1905_vm11, %v1904_v45, %v1892_v46 }
0x3507   :  { %1908 = vst.msk [vmem:[#allocation5] sm:$0xff] %vm1907_vm12, %v1906_v61 }
0x3508   :  { %2205 = shalt.err (!%p2202_p12)
}
0x3509   :  { %s2206_s28 = scalar_lea.hbm %s2775_s4, 128 }
0x350a   :  { %p2207_p13 = scmp.ne.s32.totalorder %s2775_s4, %s2206_s28  ;;  %p2210_p0 = scmp.lt.u32.totalorder %s2206_s28, %s2775_s4 }
0x350c   :  { %p2212_p1 = pnand %p2210_p0, %p2207_p13 }
0x350e   :  { %2215 = shalt.err (!%p2212_p1)
}
0x350f   :  { %1920 = dma.vmem_to_hbm [thread:$0]  %s1918_s25, 128, %s2775_s4, [#allocation4]  }
0x3510   :  { %2218 = dma.done.wait [#allocation4], 128  }
0x3511   :  { %2219 = vsyncadd [#allocation4], 4294967168 }
0x3512   :  { %1926 = vsyncpa [#allocation3], 1 }
0x3513   :  { %1927 = vsyncpa [#allocation4], 1 }

</bundles_post_ra>
